<compile_context>
chip_gen: v7x
topology: tpu7x:2x2x1
jax: 0.10.0
libtpu: 0.0.40
codegen_flags: <defaults>
</compile_context>

<pallas_src>
from functools import partial

import jax
import jax.numpy as jnp
from jax.experimental import pallas as pl
from jax.experimental.pallas import tpu as pltpu

_VMEM = pl.BlockSpec(memory_space=pltpu.MemorySpace.VMEM)
_EPS = 1e-5


# ----------------------------- Pallas kernels -------------------------------

def _bn(x, g, b, eps):
    """Training-mode BatchNorm1d over rows (axis 0), all in f32."""
    mean = jnp.mean(x, axis=0, keepdims=True)
    var = jnp.mean(jnp.square(x - mean), axis=0, keepdims=True)
    return (x - mean) * jax.lax.rsqrt(var + eps) * g + b


def _feat_kernel(x_ref, g_ref, b_ref, w_ref, o_ref, *, eps):
    # bn_feat -> conv_feat (gfn: x @ W only, no propagate, no bias) -> ReLU
    xn = _bn(x_ref[...], g_ref[...], b_ref[...], eps)
    h = jnp.dot(xn.astype(jnp.bfloat16), w_ref[...],
                preferred_element_type=jnp.float32)
    o_ref[...] = jnp.maximum(h, 0.0)


def _gin_stack_kernel(a_ref, h_ref, w1_ref, b1_ref, g_ref, bb_ref,
                      w2_ref, b2_ref, o_ref, *, eps, n_layers):
    # All GIN layers fused; intermediates never leave VMEM/vregs.
    a = a_ref[...]                                   # bf16 [N, N] = I + S
    h = h_ref[...]                                   # f32 [N, H]
    for l in range(n_layers):                        # static unroll
        agg = jnp.dot(a, h.astype(jnp.bfloat16),
                      preferred_element_type=jnp.float32)
        if l > 0:
            # reference: conv(x + x_old) with x_old == current x  =>  2*x
            agg = 2.0 * agg
        z = jnp.dot(agg.astype(jnp.bfloat16), w1_ref[l],
                    preferred_element_type=jnp.float32) + b1_ref[l]
        z = jnp.maximum(_bn(z, g_ref[l], bb_ref[l], eps), 0.0)
        h = jnp.maximum(jnp.dot(z.astype(jnp.bfloat16), w2_ref[l],
                                preferred_element_type=jnp.float32) + b2_ref[l],
                        0.0)
    o_ref[...] = h


def _att_kernel(h_ref, nw_ref, nb_ref, ews_ref, ewd_ref, eb_ref,
                xc_ref, xo_ref, asrc_ref, adst_ref):
    # node attention softmax + xc/xo split, plus the two per-node halves of
    # the edge-attention logits (avoids materializing [E, 2H] edge_rep).
    h = h_ref[...]
    hb = h.astype(jnp.bfloat16)
    nl = jnp.dot(hb, nw_ref[...], preferred_element_type=jnp.float32) + nb_ref[...]
    m = jnp.max(nl, axis=-1, keepdims=True)
    e = jnp.exp(nl - m)
    att = e * pl.reciprocal(jnp.sum(e, axis=-1, keepdims=True), approx=True)
    xc_ref[...] = att[:, 0:1] * h
    xo_ref[...] = att[:, 1:2] * h
    asrc_ref[...] = (jnp.dot(hb, ews_ref[...], preferred_element_type=jnp.float32)
                     + eb_ref[...])
    adst_ref[...] = jnp.dot(hb, ewd_ref[...], preferred_element_type=jnp.float32)


def _branch_pool_kernel(x_ref, g_ref, b_ref, w_ref, p_ref, bias_ref, m_ref,
                        o_ref, *, eps):
    # one GCN branch: BN -> @W -> sym-norm propagate + bias -> ReLU -> pool
    xn = _bn(x_ref[...], g_ref[...], b_ref[...], eps)
    xw = jnp.dot(xn.astype(jnp.bfloat16), w_ref[...],
                 preferred_element_type=jnp.float32)
    prop = jnp.maximum(
        jnp.dot(p_ref[...], xw.astype(jnp.bfloat16),
                preferred_element_type=jnp.float32) + bias_ref[...], 0.0)
    o_ref[...] = jnp.dot(m_ref[...], prop.astype(jnp.bfloat16),
                         preferred_element_type=jnp.float32)


def _readout_kernel(x_ref, g1_ref, b1_ref, w1_ref, bias1_ref,
                    g2_ref, b2_ref, w2_ref, bias2_ref, o_ref, *, eps):
    # one readout head: BN -> Linear -> ReLU -> BN -> Linear -> log_softmax
    z = _bn(x_ref[...], g1_ref[...], b1_ref[...], eps)
    z = jnp.maximum(jnp.dot(z.astype(jnp.bfloat16), w1_ref[...],
                            preferred_element_type=jnp.float32) + bias1_ref[...],
                    0.0)
    z = _bn(z, g2_ref[...], b2_ref[...], eps)
    logits = (jnp.dot(z.astype(jnp.bfloat16), w2_ref[...],
                      preferred_element_type=jnp.float32) + bias2_ref[...])
    m = jnp.max(logits, axis=-1, keepdims=True)
    lse = jnp.log(jnp.sum(jnp.exp(logits - m), axis=-1, keepdims=True))
    o_ref[...] = (logits - m) - lse


# ------------------------------ kernel wrappers ------------------------------

def feat_stage(x, bn_g, bn_b, w):
    n, f = x.shape
    h = w.shape[1]
    return pl.pallas_call(
        partial(_feat_kernel, eps=_EPS),
        out_shape=jax.ShapeDtypeStruct((n, h), jnp.float32),
        in_specs=[_VMEM] * 4,
        out_specs=_VMEM,
    )(x.astype(jnp.float32),
      bn_g.reshape(1, f).astype(jnp.float32),
      bn_b.reshape(1, f).astype(jnp.float32),
      w.astype(jnp.bfloat16))


def gin_stack(a_gin, h, w1, b1, g, b, w2, b2):
    n, hid = h.shape
    nl = w1.shape[0]
    return pl.pallas_call(
        partial(_gin_stack_kernel, eps=_EPS, n_layers=nl),
        out_shape=jax.ShapeDtypeStruct((n, hid), jnp.float32),
        in_specs=[_VMEM] * 8,
        out_specs=_VMEM,
    )(a_gin, h, w1, b1, g, b, w2, b2)


def att_stage(h, nw, nb, ews, ewd, eb):
    n, hid = h.shape
    return pl.pallas_call(
        _att_kernel,
        out_shape=(jax.ShapeDtypeStruct((n, hid), jnp.float32),
                   jax.ShapeDtypeStruct((n, hid), jnp.float32),
                   jax.ShapeDtypeStruct((n, 2), jnp.float32),
                   jax.ShapeDtypeStruct((n, 2), jnp.float32)),
        in_specs=[_VMEM] * 6,
        out_specs=(_VMEM, _VMEM, _VMEM, _VMEM),
    )(h, nw.astype(jnp.bfloat16), nb.reshape(1, 2).astype(jnp.float32),
      ews.astype(jnp.bfloat16), ewd.astype(jnp.bfloat16),
      eb.reshape(1, 2).astype(jnp.float32))


def branch_pool(x2, g2, b2, w2, p2, bias2, pool_m):
    # both GCN branches batched on grid=(2,)
    _, n, hid = x2.shape
    bsz = pool_m.shape[0]
    spec = lambda d1, d2: pl.BlockSpec((None, d1, d2), lambda i: (i, 0, 0))
    return pl.pallas_call(
        partial(_branch_pool_kernel, eps=_EPS),
        grid=(2,),
        out_shape=jax.ShapeDtypeStruct((2, bsz, hid), jnp.float32),
        in_specs=[spec(n, hid), spec(1, hid), spec(1, hid), spec(hid, hid),
                  spec(n, n), spec(1, hid),
                  pl.BlockSpec((bsz, n), lambda i: (0, 0))],
        out_specs=spec(bsz, hid),
        compiler_params=pltpu.CompilerParams(dimension_semantics=("parallel",)),
    )(x2, g2, b2, w2, p2, bias2, pool_m)


def readout_heads(xin, g1, b1, w1, bias1, g2, b2, w2, bias2):
    # the three readout heads (c / o / co) batched on grid=(3,)
    _, bsz, hid = xin.shape
    ncls = w2.shape[-1]
    spec = lambda d1, d2: pl.BlockSpec((None, d1, d2), lambda i: (i, 0, 0))
    return pl.pallas_call(
        partial(_readout_kernel, eps=_EPS),
        grid=(3,),
        out_shape=jax.ShapeDtypeStruct((3, bsz, ncls), jnp.float32),
        in_specs=[spec(bsz, hid), spec(1, hid), spec(1, hid), spec(hid, hid),
                  spec(1, hid), spec(1, hid), spec(1, hid), spec(hid, ncls),
                  spec(1, ncls)],
        out_specs=spec(bsz, ncls),
        compiler_params=pltpu.CompilerParams(dimension_semantics=("parallel",)),
    )(xin, g1, b1, w1, bias1, g2, b2, w2, bias2)


# ------------------------------- parameters ---------------------------------

class Args:
    hidden = 32
    layers = 2
    fc_num = 2
    cat_or_add = "add"


def init_params(key, num_features, num_classes, hidden, layers):
    keys = iter(jax.random.split(key, 64))

    def glorot(shape):
        fan_in, fan_out = shape
        std = (2.0 / (fan_in + fan_out)) ** 0.5
        return std * jax.random.normal(next(keys), shape, jnp.float32)

    zeros = lambda n: jnp.zeros((n,), jnp.float32)
    bn_g = lambda n: jnp.ones((n,), jnp.float32)
    bn_b = lambda n: jnp.full((n,), 1e-4, jnp.float32)

    p = dict(
        bn_feat_g=bn_g(num_features), bn_feat_b=bn_b(num_features),
        conv_feat_w=glorot((num_features, hidden)),          # gfn conv: x @ W
        eatt_w=glorot((2 * hidden, 2)), eatt_b=zeros(2),
        natt_w=glorot((hidden, 2)), natt_b=zeros(2),
        bnc_g=bn_g(hidden), bnc_b=bn_b(hidden),
        bno_g=bn_g(hidden), bno_b=bn_b(hidden),
        ctx_w=glorot((hidden, hidden)), ctx_b=zeros(hidden),
        obj_w=glorot((hidden, hidden)), obj_b=zeros(hidden),
        gin=[],
    )
    for _ in range(layers):
        p["gin"].append(dict(
            w1=glorot((hidden, hidden)), b1=zeros(hidden),
            bn_g=bn_g(hidden), bn_b=bn_b(hidden),
            w2=glorot((hidden, hidden)), b2=zeros(hidden)))
    for pre in ("fc_c", "fc_o", "fc_co"):
        p[pre + "1_bn_g"] = bn_g(hidden); p[pre + "1_bn_b"] = bn_b(hidden)
        p[pre + "1_w"] = glorot((hidden, hidden)); p[pre + "1_b"] = zeros(hidden)
        p[pre + "2_bn_g"] = bn_g(hidden); p[pre + "2_bn_b"] = bn_b(hidden)
        p[pre + "2_w"] = glorot((hidden, num_classes)); p[pre + "2_b"] = zeros(num_classes)
    return p


# -------------------------------- forward -----------------------------------

def causal_gin_forward(params, x, edge_index, batch, num_graphs, perm):
    N = x.shape[0]
    H = params["conv_feat_w"].shape[1]
    C = params["fc_c2_w"].shape[1]
    row, col = edge_index[0], edge_index[1]       # (source, target)

    # ---- stage 1: bn_feat -> conv_feat (gfn) -> ReLU
    h = feat_stage(x, params["bn_feat_g"], params["bn_feat_b"],
                   params["conv_feat_w"])

    # ---- stage 2: all GIN layers fused in one kernel
    # GIN aggregation matrix (I + S) with S[t, s] = #edges s->t (exact in bf16).
    S = jnp.zeros((N, N), jnp.float32).at[col, row].add(1.0)
    a_gin = (S + jnp.eye(N, dtype=jnp.float32)).astype(jnp.bfloat16)
    L = len(params["gin"])
    stk = lambda k: jnp.stack([lay[k] for lay in params["gin"]])
    h = gin_stack(a_gin, h,
                  stk("w1").astype(jnp.bfloat16), stk("b1").reshape(L, 1, H),
                  stk("bn_g").reshape(L, 1, H), stk("bn_b").reshape(L, 1, H),
                  stk("w2").astype(jnp.bfloat16), stk("b2").reshape(L, 1, H))

    # ---- stage 3: node attention + per-node halves of the edge-att logits
    xc, xo, att_src, att_dst = att_stage(
        h, params["natt_w"], params["natt_b"],
        params["eatt_w"][:H], params["eatt_w"][H:], params["eatt_b"])

    # edge attention: logits(e) = h[row_e] @ W_top + h[col_e] @ W_bot + b.
    # TODO(synk): this tiny [E,2] gather + softmax stays in XLA next to the
    # scatter below; for large graphs do it in-kernel with scalar-prefetched
    # edge indices.
    elog = att_src[row] + att_dst[col]
    elog = elog - jnp.max(elog, axis=-1, keepdims=True)
    ee = jnp.exp(elog)
    edge_att = ee / jnp.sum(ee, axis=-1, keepdims=True)        # [E, 2] = (c, o)

    # ---- GCN sym-normalized propagation matrices: ONE shared scatter pattern
    # (degrees scattered on the source index, exactly as in GCNConv.norm).
    # TODO(synk): dense [N,N] propagation is only for small graphs; at large N
    # replace with a sparse segment-sum kernel (PrefetchScalarGridSpec) and a
    # tiled matmul (mandatory on v7x's 64 MiB VMEM, 2-TC parallel grid).
    # TODO(synk): assumes the input graph has no pre-existing self loops
    # (remove_self_loops would otherwise drop them first).
    loop = jnp.arange(N)
    row_a = jnp.concatenate([row, loop])
    col_a = jnp.concatenate([col, loop])
    w_a = jnp.concatenate([edge_att, jnp.ones((N, 2), jnp.float32)], axis=0)
    deg = jnp.zeros((N, 2), jnp.float32).at[row_a].add(w_a)
    dinv = jnp.where(deg > 0, jax.lax.rsqrt(deg), 0.0)
    norm = dinv[row_a] * w_a * dinv[col_a]                     # [E+N, 2]
    P = jnp.zeros((N, N, 2), jnp.float32).at[col_a, row_a].add(norm)
    P = jnp.moveaxis(P, 2, 0).astype(jnp.bfloat16)             # [2, N, N]

    # global_add_pool as one-hot matmul (shared by both branches)
    pool_m = (batch[None, :] == jnp.arange(num_graphs)[:, None]).astype(jnp.bfloat16)

    # ---- stage 4: both branches (BN -> @W -> propagate+bias+ReLU -> pool)
    x2 = jnp.stack([xc, xo])                                   # [2, N, H]
    g2 = jnp.stack([params["bnc_g"], params["bno_g"]]).reshape(2, 1, H)
    b2 = jnp.stack([params["bnc_b"], params["bno_b"]]).reshape(2, 1, H)
    w2 = jnp.stack([params["ctx_w"], params["obj_w"]]).astype(jnp.bfloat16)
    bias2 = jnp.stack([params["ctx_b"], params["obj_b"]]).reshape(2, 1, H)
    pooled = branch_pool(x2, g2, b2, w2, P, bias2, pool_m)     # [2, B, H]
    xc_p, xo_p = pooled[0], pooled[1]

    # ---- stage 5: the three readout heads, batched on grid=(3,)
    # TODO(synk): random.shuffle in random_readout_layer replaced by the fixed
    # deterministic permutation `perm` (args.cat_or_add == 'add').
    xin = jnp.stack([xc_p, xo_p, xc_p[perm] + xo_p])           # [3, B, H]
    pre = ("fc_c", "fc_o", "fc_co")
    r_g1 = jnp.stack([params[p + "1_bn_g"] for p in pre]).reshape(3, 1, H)
    r_b1 = jnp.stack([params[p + "1_bn_b"] for p in pre]).reshape(3, 1, H)
    r_w1 = jnp.stack([params[p + "1_w"] for p in pre]).astype(jnp.bfloat16)
    r_bias1 = jnp.stack([params[p + "1_b"] for p in pre]).reshape(3, 1, H)
    r_g2 = jnp.stack([params[p + "2_bn_g"] for p in pre]).reshape(3, 1, H)
    r_b2 = jnp.stack([params[p + "2_bn_b"] for p in pre]).reshape(3, 1, H)
    r_w2 = jnp.stack([params[p + "2_w"] for p in pre]).astype(jnp.bfloat16)
    r_bias2 = jnp.stack([params[p + "2_b"] for p in pre]).reshape(3, 1, C)
    logp = readout_heads(xin, r_g1, r_b1, r_w1, r_bias1,
                         r_g2, r_b2, r_w2, r_bias2)            # [3, B, C]
    return logp[0], logp[1], logp[2]       # (xc_logis, xo_logis, xco_logis)


# ---------------------------------- main -------------------------------------

if __name__ == "__main__":
    key = jax.random.PRNGKey(0)
    k_x, k_p, k_perm = jax.random.split(key, 3)

    num_features, num_classes = 8, 3
    args = Args()
    num_graphs = 2
    nodes_per_graph = 6
    N = num_graphs * nodes_per_graph

    # ring graph inside each of the 2 graphs, both edge directions, no self loops
    rows, cols = [], []
    for g in range(num_graphs):
        base = g * nodes_per_graph
        for i in range(nodes_per_graph):
            a, b = base + i, base + (i + 1) % nodes_per_graph
            rows += [a, b]
            cols += [b, a]
    edge_index = jnp.array([rows, cols], dtype=jnp.int32)        # [2, E]
    batch = jnp.array(sum([[g] * nodes_per_graph for g in range(num_graphs)], []),
                      dtype=jnp.int32)                           # [N]
    x = jax.random.normal(k_x, (N, num_features), jnp.float32)   # [N, F]

    params = init_params(k_p, num_features, num_classes, args.hidden, args.layers)
    perm = jax.random.permutation(k_perm, num_graphs)            # deterministic shuffle

    fwd = jax.jit(causal_gin_forward, static_argnums=(4,))
    outs = fwd(params, x, edge_index, batch, num_graphs, perm)
    outs = jax.block_until_ready(outs)

    assert outs[0].shape == (num_graphs, num_classes)
    assert outs[1].shape == (num_graphs, num_classes)
    assert outs[2].shape == (num_graphs, num_classes)
    assert all(bool(jnp.all(jnp.isfinite(o))) for o in outs)
    print("KERNEL_OK")
</pallas_src>

<mosaic_0001>
module attributes {stable_mosaic.version = 11 : i64} {
  func.func @_gin_stack_kernel(%arg0: memref<12x12xbf16, #tpu.memory_space<vmem>>, %arg1: memref<12x32xf32, #tpu.memory_space<vmem>>, %arg2: memref<2x32x32xbf16, #tpu.memory_space<vmem>>, %arg3: memref<2x1x32xf32, #tpu.memory_space<vmem>>, %arg4: memref<2x1x32xf32, #tpu.memory_space<vmem>>, %arg5: memref<2x1x32xf32, #tpu.memory_space<vmem>>, %arg6: memref<2x32x32xbf16, #tpu.memory_space<vmem>>, %arg7: memref<2x1x32xf32, #tpu.memory_space<vmem>>, %arg8: memref<12x32xf32, #tpu.memory_space<vmem>>) attributes {dimension_semantics = [], scalar_prefetch = 0 : i64, scratch_operands = 0 : i64, tpu.core_type = #tpu.core_type<tc>} {
    %c0 = arith.constant 0 : index
    %c0_0 = arith.constant 0 : index
    %0 = vector.load %arg0[%c0, %c0_0] : memref<12x12xbf16, #tpu.memory_space<vmem>>, vector<12x12xbf16>
    %c0_1 = arith.constant 0 : index
    %c0_2 = arith.constant 0 : index
    %1 = vector.load %arg1[%c0_1, %c0_2] : memref<12x32xf32, #tpu.memory_space<vmem>>, vector<12x32xf32>
    %2 = arith.truncf %1 : vector<12x32xf32> to vector<12x32xbf16>
    %cst = arith.constant dense<0.000000e+00> : vector<12x32xf32>
    %3 = tpu.matmul %0, %2, %cst {dimension_numbers = #tpu.dot_dimension_numbers<[1], [0], [0], [1], [0, 0, 1, 1], [], []>} : vector<12x12xbf16>, vector<12x32xbf16>, vector<12x32xf32> -> vector<12x32xf32>
    %4 = arith.truncf %3 : vector<12x32xf32> to vector<12x32xbf16>
    %c0_3 = arith.constant 0 : index
    %c0_4 = arith.constant 0 : index
    %c0_5 = arith.constant 0 : index
    %5 = vector.load %arg2[%c0_3, %c0_4, %c0_5] : memref<2x32x32xbf16, #tpu.memory_space<vmem>>, vector<1x32x32xbf16>
    %6 = vector.shape_cast %5 : vector<1x32x32xbf16> to vector<32x32xbf16>
    %cst_6 = arith.constant dense<0.000000e+00> : vector<12x32xf32>
    %7 = tpu.matmul %4, %6, %cst_6 {dimension_numbers = #tpu.dot_dimension_numbers<[1], [0], [0], [1], [0, 0, 1, 1], [], []>} : vector<12x32xbf16>, vector<32x32xbf16>, vector<12x32xf32> -> vector<12x32xf32>
    %c0_7 = arith.constant 0 : index
    %c0_8 = arith.constant 0 : index
    %c0_9 = arith.constant 0 : index
    %8 = vector.load %arg3[%c0_7, %c0_8, %c0_9] : memref<2x1x32xf32, #tpu.memory_space<vmem>>, vector<1x1x32xf32>
    %9 = vector.shape_cast %8 : vector<1x1x32xf32> to vector<1x32xf32>
    %10 = vector.broadcast %9 : vector<1x32xf32> to vector<12x32xf32>
    %11 = arith.addf %7, %10 : vector<12x32xf32>
    %c0_10 = arith.constant 0 : index
    %c0_11 = arith.constant 0 : index
    %c0_12 = arith.constant 0 : index
    %12 = vector.load %arg4[%c0_10, %c0_11, %c0_12] : memref<2x1x32xf32, #tpu.memory_space<vmem>>, vector<1x1x32xf32>
    %13 = vector.shape_cast %12 : vector<1x1x32xf32> to vector<1x32xf32>
    %c0_13 = arith.constant 0 : index
    %c0_14 = arith.constant 0 : index
    %c0_15 = arith.constant 0 : index
    %14 = vector.load %arg5[%c0_13, %c0_14, %c0_15] : memref<2x1x32xf32, #tpu.memory_space<vmem>>, vector<1x1x32xf32>
    %15 = vector.shape_cast %14 : vector<1x1x32xf32> to vector<1x32xf32>
    %cst_16 = arith.constant dense<0.000000e+00> : vector<32xf32>
    %16 = vector.multi_reduction <add>, %11, %cst_16 [0] : vector<12x32xf32> to vector<32xf32>
    %17 = vector.shape_cast %16 : vector<32xf32> to vector<1x32xf32>
    %cst_17 = arith.constant 1.200000e+01 : f32
    %18 = vector.broadcast %cst_17 : f32 to vector<1x32xf32>
    %19 = arith.divf %17, %18 : vector<1x32xf32>
    %20 = vector.broadcast %19 : vector<1x32xf32> to vector<12x32xf32>
    %21 = arith.subf %11, %20 : vector<12x32xf32>
    %22 = arith.mulf %21, %21 : vector<12x32xf32>
    %cst_18 = arith.constant dense<0.000000e+00> : vector<32xf32>
    %23 = vector.multi_reduction <add>, %22, %cst_18 [0] : vector<12x32xf32> to vector<32xf32>
    %24 = vector.shape_cast %23 : vector<32xf32> to vector<1x32xf32>
    %cst_19 = arith.constant 1.200000e+01 : f32
    %25 = vector.broadcast %cst_19 : f32 to vector<1x32xf32>
    %26 = arith.divf %24, %25 : vector<1x32xf32>
    %27 = vector.broadcast %19 : vector<1x32xf32> to vector<12x32xf32>
    %28 = arith.subf %11, %27 : vector<12x32xf32>
    %cst_20 = arith.constant 9.99999974E-6 : f32
    %29 = vector.broadcast %cst_20 : f32 to vector<1x32xf32>
    %30 = arith.addf %26, %29 : vector<1x32xf32>
    %31 = math.rsqrt %30 : vector<1x32xf32>
    %32 = vector.broadcast %31 : vector<1x32xf32> to vector<12x32xf32>
    %33 = arith.mulf %28, %32 : vector<12x32xf32>
    %34 = vector.broadcast %13 : vector<1x32xf32> to vector<12x32xf32>
    %35 = arith.mulf %33, %34 : vector<12x32xf32>
    %36 = vector.broadcast %15 : vector<1x32xf32> to vector<12x32xf32>
    %37 = arith.addf %35, %36 : vector<12x32xf32>
    %cst_21 = arith.constant 0.000000e+00 : f32
    %38 = vector.broadcast %cst_21 : f32 to vector<12x32xf32>
    %39 = arith.maximumf %37, %38 : vector<12x32xf32>
    %40 = arith.truncf %39 : vector<12x32xf32> to vector<12x32xbf16>
    %c0_22 = arith.constant 0 : index
    %c0_23 = arith.constant 0 : index
    %c0_24 = arith.constant 0 : index
    %41 = vector.load %arg6[%c0_22, %c0_23, %c0_24] : memref<2x32x32xbf16, #tpu.memory_space<vmem>>, vector<1x32x32xbf16>
    %42 = vector.shape_cast %41 : vector<1x32x32xbf16> to vector<32x32xbf16>
    %cst_25 = arith.constant dense<0.000000e+00> : vector<12x32xf32>
    %43 = tpu.matmul %40, %42, %cst_25 {dimension_numbers = #tpu.dot_dimension_numbers<[1], [0], [0], [1], [0, 0, 1, 1], [], []>} : vector<12x32xbf16>, vector<32x32xbf16>, vector<12x32xf32> -> vector<12x32xf32>
    %c0_26 = arith.constant 0 : index
    %c0_27 = arith.constant 0 : index
    %c0_28 = arith.constant 0 : index
    %44 = vector.load %arg7[%c0_26, %c0_27, %c0_28] : memref<2x1x32xf32, #tpu.memory_space<vmem>>, vector<1x1x32xf32>
    %45 = vector.shape_cast %44 : vector<1x1x32xf32> to vector<1x32xf32>
    %46 = vector.broadcast %45 : vector<1x32xf32> to vector<12x32xf32>
    %47 = arith.addf %43, %46 : vector<12x32xf32>
    %cst_29 = arith.constant 0.000000e+00 : f32
    %48 = vector.broadcast %cst_29 : f32 to vector<12x32xf32>
    %49 = arith.maximumf %47, %48 : vector<12x32xf32>
    %50 = arith.truncf %49 : vector<12x32xf32> to vector<12x32xbf16>
    %cst_30 = arith.constant dense<0.000000e+00> : vector<12x32xf32>
    %51 = tpu.matmul %0, %50, %cst_30 {dimension_numbers = #tpu.dot_dimension_numbers<[1], [0], [0], [1], [0, 0, 1, 1], [], []>} : vector<12x12xbf16>, vector<12x32xbf16>, vector<12x32xf32> -> vector<12x32xf32>
    %cst_31 = arith.constant 2.000000e+00 : f32
    %52 = vector.broadcast %cst_31 : f32 to vector<12x32xf32>
    %53 = arith.mulf %52, %51 : vector<12x32xf32>
    %54 = arith.truncf %53 : vector<12x32xf32> to vector<12x32xbf16>
    %c1 = arith.constant 1 : index
    %c0_32 = arith.constant 0 : index
    %c0_33 = arith.constant 0 : index
    %55 = vector.load %arg2[%c1, %c0_32, %c0_33] : memref<2x32x32xbf16, #tpu.memory_space<vmem>>, vector<1x32x32xbf16>
    %56 = vector.shape_cast %55 : vector<1x32x32xbf16> to vector<32x32xbf16>
    %cst_34 = arith.constant dense<0.000000e+00> : vector<12x32xf32>
    %57 = tpu.matmul %54, %56, %cst_34 {dimension_numbers = #tpu.dot_dimension_numbers<[1], [0], [0], [1], [0, 0, 1, 1], [], []>} : vector<12x32xbf16>, vector<32x32xbf16>, vector<12x32xf32> -> vector<12x32xf32>
    %c1_35 = arith.constant 1 : index
    %c0_36 = arith.constant 0 : index
    %c0_37 = arith.constant 0 : index
    %58 = vector.load %arg3[%c1_35, %c0_36, %c0_37] : memref<2x1x32xf32, #tpu.memory_space<vmem>>, vector<1x1x32xf32>
    %59 = vector.shape_cast %58 : vector<1x1x32xf32> to vector<1x32xf32>
    %60 = vector.broadcast %59 : vector<1x32xf32> to vector<12x32xf32>
    %61 = arith.addf %57, %60 : vector<12x32xf32>
    %c1_38 = arith.constant 1 : index
    %c0_39 = arith.constant 0 : index
    %c0_40 = arith.constant 0 : index
    %62 = vector.load %arg4[%c1_38, %c0_39, %c0_40] : memref<2x1x32xf32, #tpu.memory_space<vmem>>, vector<1x1x32xf32>
    %63 = vector.shape_cast %62 : vector<1x1x32xf32> to vector<1x32xf32>
    %c1_41 = arith.constant 1 : index
    %c0_42 = arith.constant 0 : index
    %c0_43 = arith.constant 0 : index
    %64 = vector.load %arg5[%c1_41, %c0_42, %c0_43] : memref<2x1x32xf32, #tpu.memory_space<vmem>>, vector<1x1x32xf32>
    %65 = vector.shape_cast %64 : vector<1x1x32xf32> to vector<1x32xf32>
    %cst_44 = arith.constant dense<0.000000e+00> : vector<32xf32>
    %66 = vector.multi_reduction <add>, %61, %cst_44 [0] : vector<12x32xf32> to vector<32xf32>
    %67 = vector.shape_cast %66 : vector<32xf32> to vector<1x32xf32>
    %cst_45 = arith.constant 1.200000e+01 : f32
    %68 = vector.broadcast %cst_45 : f32 to vector<1x32xf32>
    %69 = arith.divf %67, %68 : vector<1x32xf32>
    %70 = vector.broadcast %69 : vector<1x32xf32> to vector<12x32xf32>
    %71 = arith.subf %61, %70 : vector<12x32xf32>
    %72 = arith.mulf %71, %71 : vector<12x32xf32>
    %cst_46 = arith.constant dense<0.000000e+00> : vector<32xf32>
    %73 = vector.multi_reduction <add>, %72, %cst_46 [0] : vector<12x32xf32> to vector<32xf32>
    %74 = vector.shape_cast %73 : vector<32xf32> to vector<1x32xf32>
    %cst_47 = arith.constant 1.200000e+01 : f32
    %75 = vector.broadcast %cst_47 : f32 to vector<1x32xf32>
    %76 = arith.divf %74, %75 : vector<1x32xf32>
    %77 = vector.broadcast %69 : vector<1x32xf32> to vector<12x32xf32>
    %78 = arith.subf %61, %77 : vector<12x32xf32>
    %cst_48 = arith.constant 9.99999974E-6 : f32
    %79 = vector.broadcast %cst_48 : f32 to vector<1x32xf32>
    %80 = arith.addf %76, %79 : vector<1x32xf32>
    %81 = math.rsqrt %80 : vector<1x32xf32>
    %82 = vector.broadcast %81 : vector<1x32xf32> to vector<12x32xf32>
    %83 = arith.mulf %78, %82 : vector<12x32xf32>
    %84 = vector.broadcast %63 : vector<1x32xf32> to vector<12x32xf32>
    %85 = arith.mulf %83, %84 : vector<12x32xf32>
    %86 = vector.broadcast %65 : vector<1x32xf32> to vector<12x32xf32>
    %87 = arith.addf %85, %86 : vector<12x32xf32>
    %cst_49 = arith.constant 0.000000e+00 : f32
    %88 = vector.broadcast %cst_49 : f32 to vector<12x32xf32>
    %89 = arith.maximumf %87, %88 : vector<12x32xf32>
    %90 = arith.truncf %89 : vector<12x32xf32> to vector<12x32xbf16>
    %c1_50 = arith.constant 1 : index
    %c0_51 = arith.constant 0 : index
    %c0_52 = arith.constant 0 : index
    %91 = vector.load %arg6[%c1_50, %c0_51, %c0_52] : memref<2x32x32xbf16, #tpu.memory_space<vmem>>, vector<1x32x32xbf16>
    %92 = vector.shape_cast %91 : vector<1x32x32xbf16> to vector<32x32xbf16>
    %cst_53 = arith.constant dense<0.000000e+00> : vector<12x32xf32>
    %93 = tpu.matmul %90, %92, %cst_53 {dimension_numbers = #tpu.dot_dimension_numbers<[1], [0], [0], [1], [0, 0, 1, 1], [], []>} : vector<12x32xbf16>, vector<32x32xbf16>, vector<12x32xf32> -> vector<12x32xf32>
    %c1_54 = arith.constant 1 : index
    %c0_55 = arith.constant 0 : index
    %c0_56 = arith.constant 0 : index
    %94 = vector.load %arg7[%c1_54, %c0_55, %c0_56] : memref<2x1x32xf32, #tpu.memory_space<vmem>>, vector<1x1x32xf32>
    %95 = vector.shape_cast %94 : vector<1x1x32xf32> to vector<1x32xf32>
    %96 = vector.broadcast %95 : vector<1x32xf32> to vector<12x32xf32>
    %97 = arith.addf %93, %96 : vector<12x32xf32>
    %cst_57 = arith.constant 0.000000e+00 : f32
    %98 = vector.broadcast %cst_57 : f32 to vector<12x32xf32>
    %99 = arith.maximumf %97, %98 : vector<12x32xf32>
    %c0_58 = arith.constant 0 : index
    %c0_59 = arith.constant 0 : index
    %100 = vector.load %arg8[%c0_58, %c0_59] : memref<12x32xf32, #tpu.memory_space<vmem>>, vector<12x32xf32>
    tpu.vector_store %arg8[%c0_58, %c0_59], %99 {strides = array<i32>} : memref<12x32xf32, #tpu.memory_space<vmem>>, vector<12x32xf32>,
    return
  }
}

module attributes {stable_mosaic.version = 11 : i64} {
  func.func @_feat_kernel(%arg0: memref<12x8xf32, #tpu.memory_space<vmem>>, %arg1: memref<1x8xf32, #tpu.memory_space<vmem>>, %arg2: memref<1x8xf32, #tpu.memory_space<vmem>>, %arg3: memref<8x32xbf16, #tpu.memory_space<vmem>>, %arg4: memref<12x32xf32, #tpu.memory_space<vmem>>) attributes {dimension_semantics = [], scalar_prefetch = 0 : i64, scratch_operands = 0 : i64, tpu.core_type = #tpu.core_type<tc>} {
    %c0 = arith.constant 0 : index
    %c0_0 = arith.constant 0 : index
    %0 = vector.load %arg0[%c0, %c0_0] : memref<12x8xf32, #tpu.memory_space<vmem>>, vector<12x8xf32>
    %c0_1 = arith.constant 0 : index
    %c0_2 = arith.constant 0 : index
    %1 = vector.load %arg1[%c0_1, %c0_2] : memref<1x8xf32, #tpu.memory_space<vmem>>, vector<1x8xf32>
    %c0_3 = arith.constant 0 : index
    %c0_4 = arith.constant 0 : index
    %2 = vector.load %arg2[%c0_3, %c0_4] : memref<1x8xf32, #tpu.memory_space<vmem>>, vector<1x8xf32>
    %cst = arith.constant dense<0.000000e+00> : vector<8xf32>
    %3 = vector.multi_reduction <add>, %0, %cst [0] : vector<12x8xf32> to vector<8xf32>
    %4 = vector.shape_cast %3 : vector<8xf32> to vector<1x8xf32>
    %cst_5 = arith.constant 1.200000e+01 : f32
    %5 = vector.broadcast %cst_5 : f32 to vector<1x8xf32>
    %6 = arith.divf %4, %5 : vector<1x8xf32>
    %7 = vector.broadcast %6 : vector<1x8xf32> to vector<12x8xf32>
    %8 = arith.subf %0, %7 : vector<12x8xf32>
    %9 = arith.mulf %8, %8 : vector<12x8xf32>
    %cst_6 = arith.constant dense<0.000000e+00> : vector<8xf32>
    %10 = vector.multi_reduction <add>, %9, %cst_6 [0] : vector<12x8xf32> to vector<8xf32>
    %11 = vector.shape_cast %10 : vector<8xf32> to vector<1x8xf32>
    %cst_7 = arith.constant 1.200000e+01 : f32
    %12 = vector.broadcast %cst_7 : f32 to vector<1x8xf32>
    %13 = arith.divf %11, %12 : vector<1x8xf32>
    %14 = vector.broadcast %6 : vector<1x8xf32> to vector<12x8xf32>
    %15 = arith.subf %0, %14 : vector<12x8xf32>
    %cst_8 = arith.constant 9.99999974E-6 : f32
    %16 = vector.broadcast %cst_8 : f32 to vector<1x8xf32>
    %17 = arith.addf %13, %16 : vector<1x8xf32>
    %18 = math.rsqrt %17 : vector<1x8xf32>
    %19 = vector.broadcast %18 : vector<1x8xf32> to vector<12x8xf32>
    %20 = arith.mulf %15, %19 : vector<12x8xf32>
    %21 = vector.broadcast %1 : vector<1x8xf32> to vector<12x8xf32>
    %22 = arith.mulf %20, %21 : vector<12x8xf32>
    %23 = vector.broadcast %2 : vector<1x8xf32> to vector<12x8xf32>
    %24 = arith.addf %22, %23 : vector<12x8xf32>
    %25 = arith.truncf %24 : vector<12x8xf32> to vector<12x8xbf16>
    %c0_9 = arith.constant 0 : index
    %c0_10 = arith.constant 0 : index
    %26 = vector.load %arg3[%c0_9, %c0_10] : memref<8x32xbf16, #tpu.memory_space<vmem>>, vector<8x32xbf16>
    %cst_11 = arith.constant dense<0.000000e+00> : vector<12x32xf32>
    %27 = tpu.matmul %25, %26, %cst_11 {dimension_numbers = #tpu.dot_dimension_numbers<[1], [0], [0], [1], [0, 0, 1, 1], [], []>} : vector<12x8xbf16>, vector<8x32xbf16>, vector<12x32xf32> -> vector<12x32xf32>
    %cst_12 = arith.constant 0.000000e+00 : f32
    %28 = vector.broadcast %cst_12 : f32 to vector<12x32xf32>
    %29 = arith.maximumf %27, %28 : vector<12x32xf32>
    %c0_13 = arith.constant 0 : index
    %c0_14 = arith.constant 0 : index
    %30 = vector.load %arg4[%c0_13, %c0_14] : memref<12x32xf32, #tpu.memory_space<vmem>>, vector<12x32xf32>
    tpu.vector_store %arg4[%c0_13, %c0_14], %29 {strides = array<i32>} : memref<12x32xf32, #tpu.memory_space<vmem>>, vector<12x32xf32>,
    return
  }
}

module attributes {stable_mosaic.version = 11 : i64} {
  func.func @_att_kernel(%arg0: memref<12x32xf32, #tpu.memory_space<vmem>>, %arg1: memref<32x2xbf16, #tpu.memory_space<vmem>>, %arg2: memref<1x2xf32, #tpu.memory_space<vmem>>, %arg3: memref<32x2xbf16, #tpu.memory_space<vmem>>, %arg4: memref<32x2xbf16, #tpu.memory_space<vmem>>, %arg5: memref<1x2xf32, #tpu.memory_space<vmem>>, %arg6: memref<12x32xf32, #tpu.memory_space<vmem>>, %arg7: memref<12x32xf32, #tpu.memory_space<vmem>>, %arg8: memref<12x2xf32, #tpu.memory_space<vmem>>, %arg9: memref<12x2xf32, #tpu.memory_space<vmem>>) attributes {dimension_semantics = [], scalar_prefetch = 0 : i64, scratch_operands = 0 : i64, tpu.core_type = #tpu.core_type<tc>} {
    %c0 = arith.constant 0 : index
    %c0_0 = arith.constant 0 : index
    %0 = vector.load %arg0[%c0, %c0_0] : memref<12x32xf32, #tpu.memory_space<vmem>>, vector<12x32xf32>
    %1 = arith.truncf %0 : vector<12x32xf32> to vector<12x32xbf16>
    %c0_1 = arith.constant 0 : index
    %c0_2 = arith.constant 0 : index
    %2 = vector.load %arg1[%c0_1, %c0_2] : memref<32x2xbf16, #tpu.memory_space<vmem>>, vector<32x2xbf16>
    %cst = arith.constant dense<0.000000e+00> : vector<12x2xf32>
    %3 = tpu.matmul %1, %2, %cst {dimension_numbers = #tpu.dot_dimension_numbers<[1], [0], [0], [1], [0, 0, 1, 1], [], []>} : vector<12x32xbf16>, vector<32x2xbf16>, vector<12x2xf32> -> vector<12x2xf32>
    %c0_3 = arith.constant 0 : index
    %c0_4 = arith.constant 0 : index
    %4 = vector.load %arg2[%c0_3, %c0_4] : memref<1x2xf32, #tpu.memory_space<vmem>>, vector<1x2xf32>
    %5 = vector.broadcast %4 : vector<1x2xf32> to vector<12x2xf32>
    %6 = arith.addf %3, %5 : vector<12x2xf32>
    %cst_5 = arith.constant dense<0xFF800000> : vector<12xf32>
    %7 = vector.multi_reduction <maximumf>, %6, %cst_5 [1] : vector<12x2xf32> to vector<12xf32>
    %8 = vector.shape_cast %7 : vector<12xf32> to vector<12x1xf32>
    %9 = vector.broadcast %8 : vector<12x1xf32> to vector<12x2xf32>
    %10 = arith.subf %6, %9 : vector<12x2xf32>
    %11 = math.exp %10 : vector<12x2xf32>
    %cst_6 = arith.constant dense<0.000000e+00> : vector<12xf32>
    %12 = vector.multi_reduction <add>, %11, %cst_6 [1] : vector<12x2xf32> to vector<12xf32>
    %13 = vector.shape_cast %12 : vector<12xf32> to vector<12x1xf32>
    %14 = tpu.reciprocal %13 {approx = true} : vector<12x1xf32> -> vector<12x1xf32>
    %15 = vector.broadcast %14 : vector<12x1xf32> to vector<12x2xf32>
    %16 = arith.mulf %11, %15 : vector<12x2xf32>
    %17 = vector.extract_strided_slice %16 {offsets = [0, 0], sizes = [12, 1], strides = [1, 1]} : vector<12x2xf32> to vector<12x1xf32>
    %18 = vector.broadcast %17 : vector<12x1xf32> to vector<12x32xf32>
    %19 = arith.mulf %18, %0 : vector<12x32xf32>
    %c0_7 = arith.constant 0 : index
    %c0_8 = arith.constant 0 : index
    %20 = vector.load %arg6[%c0_7, %c0_8] : memref<12x32xf32, #tpu.memory_space<vmem>>, vector<12x32xf32>
    tpu.vector_store %arg6[%c0_7, %c0_8], %19 {strides = array<i32>} : memref<12x32xf32, #tpu.memory_space<vmem>>, vector<12x32xf32>,
    %21 = vector.extract_strided_slice %16 {offsets = [0, 1], sizes = [12, 1], strides = [1, 1]} : vector<12x2xf32> to vector<12x1xf32>
    %22 = vector.broadcast %21 : vector<12x1xf32> to vector<12x32xf32>
    %23 = arith.mulf %22, %0 : vector<12x32xf32>
    %c0_9 = arith.constant 0 : index
    %c0_10 = arith.constant 0 : index
    %24 = vector.load %arg7[%c0_9, %c0_10] : memref<12x32xf32, #tpu.memory_space<vmem>>, vector<12x32xf32>
    tpu.vector_store %arg7[%c0_9, %c0_10], %23 {strides = array<i32>} : memref<12x32xf32, #tpu.memory_space<vmem>>, vector<12x32xf32>,
    %c0_11 = arith.constant 0 : index
    %c0_12 = arith.constant 0 : index
    %25 = vector.load %arg3[%c0_11, %c0_12] : memref<32x2xbf16, #tpu.memory_space<vmem>>, vector<32x2xbf16>
    %cst_13 = arith.constant dense<0.000000e+00> : vector<12x2xf32>
    %26 = tpu.matmul %1, %25, %cst_13 {dimension_numbers = #tpu.dot_dimension_numbers<[1], [0], [0], [1], [0, 0, 1, 1], [], []>} : vector<12x32xbf16>, vector<32x2xbf16>, vector<12x2xf32> -> vector<12x2xf32>
    %c0_14 = arith.constant 0 : index
    %c0_15 = arith.constant 0 : index
    %27 = vector.load %arg5[%c0_14, %c0_15] : memref<1x2xf32, #tpu.memory_space<vmem>>, vector<1x2xf32>
    %28 = vector.broadcast %27 : vector<1x2xf32> to vector<12x2xf32>
    %29 = arith.addf %26, %28 : vector<12x2xf32>
    %c0_16 = arith.constant 0 : index
    %c0_17 = arith.constant 0 : index
    %30 = vector.load %arg8[%c0_16, %c0_17] : memref<12x2xf32, #tpu.memory_space<vmem>>, vector<12x2xf32>
    tpu.vector_store %arg8[%c0_16, %c0_17], %29 {strides = array<i32>} : memref<12x2xf32, #tpu.memory_space<vmem>>, vector<12x2xf32>,
    %c0_18 = arith.constant 0 : index
    %c0_19 = arith.constant 0 : index
    %31 = vector.load %arg4[%c0_18, %c0_19] : memref<32x2xbf16, #tpu.memory_space<vmem>>, vector<32x2xbf16>
    %cst_20 = arith.constant dense<0.000000e+00> : vector<12x2xf32>
    %32 = tpu.matmul %1, %31, %cst_20 {dimension_numbers = #tpu.dot_dimension_numbers<[1], [0], [0], [1], [0, 0, 1, 1], [], []>} : vector<12x32xbf16>, vector<32x2xbf16>, vector<12x2xf32> -> vector<12x2xf32>
    %c0_21 = arith.constant 0 : index
    %c0_22 = arith.constant 0 : index
    %33 = vector.load %arg9[%c0_21, %c0_22] : memref<12x2xf32, #tpu.memory_space<vmem>>, vector<12x2xf32>
    tpu.vector_store %arg9[%c0_21, %c0_22], %32 {strides = array<i32>} : memref<12x2xf32, #tpu.memory_space<vmem>>, vector<12x2xf32>,
    return
  }
}

module attributes {stable_mosaic.version = 11 : i64} {
  func.func @_branch_pool_kernel(%arg0: i32, %arg1: memref<1x12x32xf32, #tpu.memory_space<vmem>>, %arg2: memref<1x1x32xf32, #tpu.memory_space<vmem>>, %arg3: memref<1x1x32xf32, #tpu.memory_space<vmem>>, %arg4: memref<1x32x32xbf16, #tpu.memory_space<vmem>>, %arg5: memref<1x12x12xbf16, #tpu.memory_space<vmem>>, %arg6: memref<1x1x32xf32, #tpu.memory_space<vmem>>, %arg7: memref<2x12xbf16, #tpu.memory_space<vmem>>, %arg8: memref<1x2x32xf32, #tpu.memory_space<vmem>>) attributes {dimension_semantics = [#tpu.dimension_semantics<parallel>], iteration_bounds = array<i64: 2>, scalar_prefetch = 0 : i64, scratch_operands = 0 : i64, tpu.core_type = #tpu.core_type<tc>, window_params = [{transform_indices = @transform_0, window_bounds = array<i64: 1, 12, 32>}, {transform_indices = @transform_1, window_bounds = array<i64: 1, 1, 32>}, {transform_indices = @transform_2, window_bounds = array<i64: 1, 1, 32>}, {transform_indices = @transform_3, window_bounds = array<i64: 1, 32, 32>}, {transform_indices = @transform_4, window_bounds = array<i64: 1, 12, 12>}, {transform_indices = @transform_5, window_bounds = array<i64: 1, 1, 32>}, {pipeline_mode = #tpu.pipeline_mode<synchronous>, transform_indices = @transform_6, window_bounds = array<i64: 2, 12>}, {transform_indices = @transform_7, window_bounds = array<i64: 1, 2, 32>}]} {
    %c0 = arith.constant 0 : index
    %c0_0 = arith.constant 0 : index
    %c0_1 = arith.constant 0 : index
    %0 = vector.load %arg1[%c0, %c0_0, %c0_1] : memref<1x12x32xf32, #tpu.memory_space<vmem>>, vector<1x12x32xf32>
    %1 = vector.shape_cast %0 : vector<1x12x32xf32> to vector<12x32xf32>
    %c0_2 = arith.constant 0 : index
    %c0_3 = arith.constant 0 : index
    %c0_4 = arith.constant 0 : index
    %2 = vector.load %arg2[%c0_2, %c0_3, %c0_4] : memref<1x1x32xf32, #tpu.memory_space<vmem>>, vector<1x1x32xf32>
    %3 = vector.shape_cast %2 : vector<1x1x32xf32> to vector<1x32xf32>
    %c0_5 = arith.constant 0 : index
    %c0_6 = arith.constant 0 : index
    %c0_7 = arith.constant 0 : index
    %4 = vector.load %arg3[%c0_5, %c0_6, %c0_7] : memref<1x1x32xf32, #tpu.memory_space<vmem>>, vector<1x1x32xf32>
    %5 = vector.shape_cast %4 : vector<1x1x32xf32> to vector<1x32xf32>
    %cst = arith.constant dense<0.000000e+00> : vector<32xf32>
    %6 = vector.multi_reduction <add>, %1, %cst [0] : vector<12x32xf32> to vector<32xf32>
    %7 = vector.shape_cast %6 : vector<32xf32> to vector<1x32xf32>
    %cst_8 = arith.constant 1.200000e+01 : f32
    %8 = vector.broadcast %cst_8 : f32 to vector<1x32xf32>
    %9 = arith.divf %7, %8 : vector<1x32xf32>
    %10 = vector.broadcast %9 : vector<1x32xf32> to vector<12x32xf32>
    %11 = arith.subf %1, %10 : vector<12x32xf32>
    %12 = arith.mulf %11, %11 : vector<12x32xf32>
    %cst_9 = arith.constant dense<0.000000e+00> : vector<32xf32>
    %13 = vector.multi_reduction <add>, %12, %cst_9 [0] : vector<12x32xf32> to vector<32xf32>
    %14 = vector.shape_cast %13 : vector<32xf32> to vector<1x32xf32>
    %cst_10 = arith.constant 1.200000e+01 : f32
    %15 = vector.broadcast %cst_10 : f32 to vector<1x32xf32>
    %16 = arith.divf %14, %15 : vector<1x32xf32>
    %17 = vector.broadcast %9 : vector<1x32xf32> to vector<12x32xf32>
    %18 = arith.subf %1, %17 : vector<12x32xf32>
    %cst_11 = arith.constant 9.99999974E-6 : f32
    %19 = vector.broadcast %cst_11 : f32 to vector<1x32xf32>
    %20 = arith.addf %16, %19 : vector<1x32xf32>
    %21 = math.rsqrt %20 : vector<1x32xf32>
    %22 = vector.broadcast %21 : vector<1x32xf32> to vector<12x32xf32>
    %23 = arith.mulf %18, %22 : vector<12x32xf32>
    %24 = vector.broadcast %3 : vector<1x32xf32> to vector<12x32xf32>
    %25 = arith.mulf %23, %24 : vector<12x32xf32>
    %26 = vector.broadcast %5 : vector<1x32xf32> to vector<12x32xf32>
    %27 = arith.addf %25, %26 : vector<12x32xf32>
    %28 = arith.truncf %27 : vector<12x32xf32> to vector<12x32xbf16>
    %c0_12 = arith.constant 0 : index
    %c0_13 = arith.constant 0 : index
    %c0_14 = arith.constant 0 : index
    %29 = vector.load %arg4[%c0_12, %c0_13, %c0_14] : memref<1x32x32xbf16, #tpu.memory_space<vmem>>, vector<1x32x32xbf16>
    %30 = vector.shape_cast %29 : vector<1x32x32xbf16> to vector<32x32xbf16>
    %cst_15 = arith.constant dense<0.000000e+00> : vector<12x32xf32>
    %31 = tpu.matmul %28, %30, %cst_15 {dimension_numbers = #tpu.dot_dimension_numbers<[1], [0], [0], [1], [0, 0, 1, 1], [], []>} : vector<12x32xbf16>, vector<32x32xbf16>, vector<12x32xf32> -> vector<12x32xf32>
    %c0_16 = arith.constant 0 : index
    %c0_17 = arith.constant 0 : index
    %c0_18 = arith.constant 0 : index
    %32 = vector.load %arg5[%c0_16, %c0_17, %c0_18] : memref<1x12x12xbf16, #tpu.memory_space<vmem>>, vector<1x12x12xbf16>
    %33 = vector.shape_cast %32 : vector<1x12x12xbf16> to vector<12x12xbf16>
    %34 = arith.truncf %31 : vector<12x32xf32> to vector<12x32xbf16>
    %cst_19 = arith.constant dense<0.000000e+00> : vector<12x32xf32>
    %35 = tpu.matmul %33, %34, %cst_19 {dimension_numbers = #tpu.dot_dimension_numbers<[1], [0], [0], [1], [0, 0, 1, 1], [], []>} : vector<12x12xbf16>, vector<12x32xbf16>, vector<12x32xf32> -> vector<12x32xf32>
    %c0_20 = arith.constant 0 : index
    %c0_21 = arith.constant 0 : index
    %c0_22 = arith.constant 0 : index
    %36 = vector.load %arg6[%c0_20, %c0_21, %c0_22] : memref<1x1x32xf32, #tpu.memory_space<vmem>>, vector<1x1x32xf32>
    %37 = vector.shape_cast %36 : vector<1x1x32xf32> to vector<1x32xf32>
    %38 = vector.broadcast %37 : vector<1x32xf32> to vector<12x32xf32>
    %39 = arith.addf %35, %38 : vector<12x32xf32>
    %cst_23 = arith.constant 0.000000e+00 : f32
    %40 = vector.broadcast %cst_23 : f32 to vector<12x32xf32>
    %41 = arith.maximumf %39, %40 : vector<12x32xf32>
    %c0_24 = arith.constant 0 : index
    %c0_25 = arith.constant 0 : index
    %42 = vector.load %arg7[%c0_24, %c0_25] : memref<2x12xbf16, #tpu.memory_space<vmem>>, vector<2x12xbf16>
    %43 = arith.truncf %41 : vector<12x32xf32> to vector<12x32xbf16>
    %cst_26 = arith.constant dense<0.000000e+00> : vector<2x32xf32>
    %44 = tpu.matmul %42, %43, %cst_26 {dimension_numbers = #tpu.dot_dimension_numbers<[1], [0], [0], [1], [0, 0, 1, 1], [], []>} : vector<2x12xbf16>, vector<12x32xbf16>, vector<2x32xf32> -> vector<2x32xf32>
    %c0_27 = arith.constant 0 : index
    %c0_28 = arith.constant 0 : index
    %c0_29 = arith.constant 0 : index
    %45 = vector.load %arg8[%c0_27, %c0_28, %c0_29] : memref<1x2x32xf32, #tpu.memory_space<vmem>>, vector<1x2x32xf32>
    %46 = vector.shape_cast %45 : vector<1x2x32xf32> to vector<2x32xf32>
    %47 = vector.shape_cast %44 : vector<2x32xf32> to vector<1x2x32xf32>
    tpu.vector_store %arg8[%c0_27, %c0_28, %c0_29], %47 {strides = array<i32>} : memref<1x2x32xf32, #tpu.memory_space<vmem>>, vector<1x2x32xf32>,
    return
  }
  func.func @transform_0(%arg0: i32) -> (i32, i32, i32) {
    %c0_i32 = arith.constant 0 : i32
    %c0_i32_0 = arith.constant 0 : i32
    %c0_i32_1 = arith.constant 0 : i32
    return %arg0, %c0_i32, %c0_i32_0 : i32, i32, i32
  }
  func.func @transform_1(%arg0: i32) -> (i32, i32, i32) {
    %c0_i32 = arith.constant 0 : i32
    %c0_i32_0 = arith.constant 0 : i32
    %c0_i32_1 = arith.constant 0 : i32
    return %arg0, %c0_i32, %c0_i32_0 : i32, i32, i32
  }
  func.func @transform_2(%arg0: i32) -> (i32, i32, i32) {
    %c0_i32 = arith.constant 0 : i32
    %c0_i32_0 = arith.constant 0 : i32
    %c0_i32_1 = arith.constant 0 : i32
    return %arg0, %c0_i32, %c0_i32_0 : i32, i32, i32
  }
  func.func @transform_3(%arg0: i32) -> (i32, i32, i32) {
    %c0_i32 = arith.constant 0 : i32
    %c0_i32_0 = arith.constant 0 : i32
    %c0_i32_1 = arith.constant 0 : i32
    return %arg0, %c0_i32, %c0_i32_0 : i32, i32, i32
  }
  func.func @transform_4(%arg0: i32) -> (i32, i32, i32) {
    %c0_i32 = arith.constant 0 : i32
    %c0_i32_0 = arith.constant 0 : i32
    %c0_i32_1 = arith.constant 0 : i32
    return %arg0, %c0_i32, %c0_i32_0 : i32, i32, i32
  }
  func.func @transform_5(%arg0: i32) -> (i32, i32, i32) {
    %c0_i32 = arith.constant 0 : i32
    %c0_i32_0 = arith.constant 0 : i32
    %c0_i32_1 = arith.constant 0 : i32
    return %arg0, %c0_i32, %c0_i32_0 : i32, i32, i32
  }
  func.func @transform_6(%arg0: i32) -> (i32, i32) {
    %c0_i32 = arith.constant 0 : i32
    %c0_i32_0 = arith.constant 0 : i32
    %c0_i32_1 = arith.constant 0 : i32
    return %c0_i32, %c0_i32_0 : i32, i32
  }
  func.func @transform_7(%arg0: i32) -> (i32, i32, i32) {
    %c0_i32 = arith.constant 0 : i32
    %c0_i32_0 = arith.constant 0 : i32
    %c0_i32_1 = arith.constant 0 : i32
    return %arg0, %c0_i32, %c0_i32_0 : i32, i32, i32
  }
}

module attributes {stable_mosaic.version = 11 : i64} {
  func.func @_readout_kernel(%arg0: i32, %arg1: memref<1x2x32xf32, #tpu.memory_space<vmem>>, %arg2: memref<1x1x32xf32, #tpu.memory_space<vmem>>, %arg3: memref<1x1x32xf32, #tpu.memory_space<vmem>>, %arg4: memref<1x32x32xbf16, #tpu.memory_space<vmem>>, %arg5: memref<1x1x32xf32, #tpu.memory_space<vmem>>, %arg6: memref<1x1x32xf32, #tpu.memory_space<vmem>>, %arg7: memref<1x1x32xf32, #tpu.memory_space<vmem>>, %arg8: memref<1x32x3xbf16, #tpu.memory_space<vmem>>, %arg9: memref<1x1x3xf32, #tpu.memory_space<vmem>>, %arg10: memref<1x2x3xf32, #tpu.memory_space<vmem>>) attributes {dimension_semantics = [#tpu.dimension_semantics<parallel>], iteration_bounds = array<i64: 3>, scalar_prefetch = 0 : i64, scratch_operands = 0 : i64, tpu.core_type = #tpu.core_type<tc>, window_params = [{transform_indices = @transform_0, window_bounds = array<i64: 1, 2, 32>}, {transform_indices = @transform_1, window_bounds = array<i64: 1, 1, 32>}, {transform_indices = @transform_2, window_bounds = array<i64: 1, 1, 32>}, {transform_indices = @transform_3, window_bounds = array<i64: 1, 32, 32>}, {transform_indices = @transform_4, window_bounds = array<i64: 1, 1, 32>}, {transform_indices = @transform_5, window_bounds = array<i64: 1, 1, 32>}, {transform_indices = @transform_6, window_bounds = array<i64: 1, 1, 32>}, {transform_indices = @transform_7, window_bounds = array<i64: 1, 32, 3>}, {transform_indices = @transform_8, window_bounds = array<i64: 1, 1, 3>}, {transform_indices = @transform_9, window_bounds = array<i64: 1, 2, 3>}]} {
    %c0 = arith.constant 0 : index
    %c0_0 = arith.constant 0 : index
    %c0_1 = arith.constant 0 : index
    %0 = vector.load %arg1[%c0, %c0_0, %c0_1] : memref<1x2x32xf32, #tpu.memory_space<vmem>>, vector<1x2x32xf32>
    %1 = vector.shape_cast %0 : vector<1x2x32xf32> to vector<2x32xf32>
    %c0_2 = arith.constant 0 : index
    %c0_3 = arith.constant 0 : index
    %c0_4 = arith.constant 0 : index
    %2 = vector.load %arg2[%c0_2, %c0_3, %c0_4] : memref<1x1x32xf32, #tpu.memory_space<vmem>>, vector<1x1x32xf32>
    %3 = vector.shape_cast %2 : vector<1x1x32xf32> to vector<1x32xf32>
    %c0_5 = arith.constant 0 : index
    %c0_6 = arith.constant 0 : index
    %c0_7 = arith.constant 0 : index
    %4 = vector.load %arg3[%c0_5, %c0_6, %c0_7] : memref<1x1x32xf32, #tpu.memory_space<vmem>>, vector<1x1x32xf32>
    %5 = vector.shape_cast %4 : vector<1x1x32xf32> to vector<1x32xf32>
    %cst = arith.constant dense<0.000000e+00> : vector<32xf32>
    %6 = vector.multi_reduction <add>, %1, %cst [0] : vector<2x32xf32> to vector<32xf32>
    %7 = vector.shape_cast %6 : vector<32xf32> to vector<1x32xf32>
    %cst_8 = arith.constant 2.000000e+00 : f32
    %8 = vector.broadcast %cst_8 : f32 to vector<1x32xf32>
    %9 = arith.divf %7, %8 : vector<1x32xf32>
    %10 = vector.broadcast %9 : vector<1x32xf32> to vector<2x32xf32>
    %11 = arith.subf %1, %10 : vector<2x32xf32>
    %12 = arith.mulf %11, %11 : vector<2x32xf32>
    %cst_9 = arith.constant dense<0.000000e+00> : vector<32xf32>
    %13 = vector.multi_reduction <add>, %12, %cst_9 [0] : vector<2x32xf32> to vector<32xf32>
    %14 = vector.shape_cast %13 : vector<32xf32> to vector<1x32xf32>
    %cst_10 = arith.constant 2.000000e+00 : f32
    %15 = vector.broadcast %cst_10 : f32 to vector<1x32xf32>
    %16 = arith.divf %14, %15 : vector<1x32xf32>
    %17 = vector.broadcast %9 : vector<1x32xf32> to vector<2x32xf32>
    %18 = arith.subf %1, %17 : vector<2x32xf32>
    %cst_11 = arith.constant 9.99999974E-6 : f32
    %19 = vector.broadcast %cst_11 : f32 to vector<1x32xf32>
    %20 = arith.addf %16, %19 : vector<1x32xf32>
    %21 = math.rsqrt %20 : vector<1x32xf32>
    %22 = vector.broadcast %21 : vector<1x32xf32> to vector<2x32xf32>
    %23 = arith.mulf %18, %22 : vector<2x32xf32>
    %24 = vector.broadcast %3 : vector<1x32xf32> to vector<2x32xf32>
    %25 = arith.mulf %23, %24 : vector<2x32xf32>
    %26 = vector.broadcast %5 : vector<1x32xf32> to vector<2x32xf32>
    %27 = arith.addf %25, %26 : vector<2x32xf32>
    %28 = arith.truncf %27 : vector<2x32xf32> to vector<2x32xbf16>
    %c0_12 = arith.constant 0 : index
    %c0_13 = arith.constant 0 : index
    %c0_14 = arith.constant 0 : index
    %29 = vector.load %arg4[%c0_12, %c0_13, %c0_14] : memref<1x32x32xbf16, #tpu.memory_space<vmem>>, vector<1x32x32xbf16>
    %30 = vector.shape_cast %29 : vector<1x32x32xbf16> to vector<32x32xbf16>
    %cst_15 = arith.constant dense<0.000000e+00> : vector<2x32xf32>
    %31 = tpu.matmul %28, %30, %cst_15 {dimension_numbers = #tpu.dot_dimension_numbers<[1], [0], [0], [1], [0, 0, 1, 1], [], []>} : vector<2x32xbf16>, vector<32x32xbf16>, vector<2x32xf32> -> vector<2x32xf32>
    %c0_16 = arith.constant 0 : index
    %c0_17 = arith.constant 0 : index
    %c0_18 = arith.constant 0 : index
    %32 = vector.load %arg5[%c0_16, %c0_17, %c0_18] : memref<1x1x32xf32, #tpu.memory_space<vmem>>, vector<1x1x32xf32>
    %33 = vector.shape_cast %32 : vector<1x1x32xf32> to vector<1x32xf32>
    %34 = vector.broadcast %33 : vector<1x32xf32> to vector<2x32xf32>
    %35 = arith.addf %31, %34 : vector<2x32xf32>
    %cst_19 = arith.constant 0.000000e+00 : f32
    %36 = vector.broadcast %cst_19 : f32 to vector<2x32xf32>
    %37 = arith.maximumf %35, %36 : vector<2x32xf32>
    %c0_20 = arith.constant 0 : index
    %c0_21 = arith.constant 0 : index
    %c0_22 = arith.constant 0 : index
    %38 = vector.load %arg6[%c0_20, %c0_21, %c0_22] : memref<1x1x32xf32, #tpu.memory_space<vmem>>, vector<1x1x32xf32>
    %39 = vector.shape_cast %38 : vector<1x1x32xf32> to vector<1x32xf32>
    %c0_23 = arith.constant 0 : index
    %c0_24 = arith.constant 0 : index
    %c0_25 = arith.constant 0 : index
    %40 = vector.load %arg7[%c0_23, %c0_24, %c0_25] : memref<1x1x32xf32, #tpu.memory_space<vmem>>, vector<1x1x32xf32>
    %41 = vector.shape_cast %40 : vector<1x1x32xf32> to vector<1x32xf32>
    %cst_26 = arith.constant dense<0.000000e+00> : vector<32xf32>
    %42 = vector.multi_reduction <add>, %37, %cst_26 [0] : vector<2x32xf32> to vector<32xf32>
    %43 = vector.shape_cast %42 : vector<32xf32> to vector<1x32xf32>
    %cst_27 = arith.constant 2.000000e+00 : f32
    %44 = vector.broadcast %cst_27 : f32 to vector<1x32xf32>
    %45 = arith.divf %43, %44 : vector<1x32xf32>
    %46 = vector.broadcast %45 : vector<1x32xf32> to vector<2x32xf32>
    %47 = arith.subf %37, %46 : vector<2x32xf32>
    %48 = arith.mulf %47, %47 : vector<2x32xf32>
    %cst_28 = arith.constant dense<0.000000e+00> : vector<32xf32>
    %49 = vector.multi_reduction <add>, %48, %cst_28 [0] : vector<2x32xf32> to vector<32xf32>
    %50 = vector.shape_cast %49 : vector<32xf32> to vector<1x32xf32>
    %cst_29 = arith.constant 2.000000e+00 : f32
    %51 = vector.broadcast %cst_29 : f32 to vector<1x32xf32>
    %52 = arith.divf %50, %51 : vector<1x32xf32>
    %53 = vector.broadcast %45 : vector<1x32xf32> to vector<2x32xf32>
    %54 = arith.subf %37, %53 : vector<2x32xf32>
    %cst_30 = arith.constant 9.99999974E-6 : f32
    %55 = vector.broadcast %cst_30 : f32 to vector<1x32xf32>
    %56 = arith.addf %52, %55 : vector<1x32xf32>
    %57 = math.rsqrt %56 : vector<1x32xf32>
    %58 = vector.broadcast %57 : vector<1x32xf32> to vector<2x32xf32>
    %59 = arith.mulf %54, %58 : vector<2x32xf32>
    %60 = vector.broadcast %39 : vector<1x32xf32> to vector<2x32xf32>
    %61 = arith.mulf %59, %60 : vector<2x32xf32>
    %62 = vector.broadcast %41 : vector<1x32xf32> to vector<2x32xf32>
    %63 = arith.addf %61, %62 : vector<2x32xf32>
    %64 = arith.truncf %63 : vector<2x32xf32> to vector<2x32xbf16>
    %c0_31 = arith.constant 0 : index
    %c0_32 = arith.constant 0 : index
    %c0_33 = arith.constant 0 : index
    %65 = vector.load %arg8[%c0_31, %c0_32, %c0_33] : memref<1x32x3xbf16, #tpu.memory_space<vmem>>, vector<1x32x3xbf16>
    %66 = vector.shape_cast %65 : vector<1x32x3xbf16> to vector<32x3xbf16>
    %cst_34 = arith.constant dense<0.000000e+00> : vector<2x3xf32>
    %67 = tpu.matmul %64, %66, %cst_34 {dimension_numbers = #tpu.dot_dimension_numbers<[1], [0], [0], [1], [0, 0, 1, 1], [], []>} : vector<2x32xbf16>, vector<32x3xbf16>, vector<2x3xf32> -> vector<2x3xf32>
    %c0_35 = arith.constant 0 : index
    %c0_36 = arith.constant 0 : index
    %c0_37 = arith.constant 0 : index
    %68 = vector.load %arg9[%c0_35, %c0_36, %c0_37] : memref<1x1x3xf32, #tpu.memory_space<vmem>>, vector<1x1x3xf32>
    %69 = vector.shape_cast %68 : vector<1x1x3xf32> to vector<1x3xf32>
    %70 = vector.broadcast %69 : vector<1x3xf32> to vector<2x3xf32>
    %71 = arith.addf %67, %70 : vector<2x3xf32>
    %cst_38 = arith.constant dense<0xFF800000> : vector<2xf32>
    %72 = vector.multi_reduction <maximumf>, %71, %cst_38 [1] : vector<2x3xf32> to vector<2xf32>
    %73 = vector.shape_cast %72 : vector<2xf32> to vector<2x1xf32>
    %74 = vector.broadcast %73 : vector<2x1xf32> to vector<2x3xf32>
    %75 = arith.subf %71, %74 : vector<2x3xf32>
    %76 = math.exp %75 : vector<2x3xf32>
    %cst_39 = arith.constant dense<0.000000e+00> : vector<2xf32>
    %77 = vector.multi_reduction <add>, %76, %cst_39 [1] : vector<2x3xf32> to vector<2xf32>
    %78 = vector.shape_cast %77 : vector<2xf32> to vector<2x1xf32>
    %79 = math.log %78 : vector<2x1xf32>
    %80 = vector.broadcast %73 : vector<2x1xf32> to vector<2x3xf32>
    %81 = arith.subf %71, %80 : vector<2x3xf32>
    %82 = vector.broadcast %79 : vector<2x1xf32> to vector<2x3xf32>
    %83 = arith.subf %81, %82 : vector<2x3xf32>
    %c0_40 = arith.constant 0 : index
    %c0_41 = arith.constant 0 : index
    %c0_42 = arith.constant 0 : index
    %84 = vector.load %arg10[%c0_40, %c0_41, %c0_42] : memref<1x2x3xf32, #tpu.memory_space<vmem>>, vector<1x2x3xf32>
    %85 = vector.shape_cast %84 : vector<1x2x3xf32> to vector<2x3xf32>
    %86 = vector.shape_cast %83 : vector<2x3xf32> to vector<1x2x3xf32>
    tpu.vector_store %arg10[%c0_40, %c0_41, %c0_42], %86 {strides = array<i32>} : memref<1x2x3xf32, #tpu.memory_space<vmem>>, vector<1x2x3xf32>,
    return
  }
  func.func @transform_0(%arg0: i32) -> (i32, i32, i32) {
    %c0_i32 = arith.constant 0 : i32
    %c0_i32_0 = arith.constant 0 : i32
    %c0_i32_1 = arith.constant 0 : i32
    return %arg0, %c0_i32, %c0_i32_0 : i32, i32, i32
  }
  func.func @transform_1(%arg0: i32) -> (i32, i32, i32) {
    %c0_i32 = arith.constant 0 : i32
    %c0_i32_0 = arith.constant 0 : i32
    %c0_i32_1 = arith.constant 0 : i32
    return %arg0, %c0_i32, %c0_i32_0 : i32, i32, i32
  }
  func.func @transform_2(%arg0: i32) -> (i32, i32, i32) {
    %c0_i32 = arith.constant 0 : i32
    %c0_i32_0 = arith.constant 0 : i32
    %c0_i32_1 = arith.constant 0 : i32
    return %arg0, %c0_i32, %c0_i32_0 : i32, i32, i32
  }
  func.func @transform_3(%arg0: i32) -> (i32, i32, i32) {
    %c0_i32 = arith.constant 0 : i32
    %c0_i32_0 = arith.constant 0 : i32
    %c0_i32_1 = arith.constant 0 : i32
    return %arg0, %c0_i32, %c0_i32_0 : i32, i32, i32
  }
  func.func @transform_4(%arg0: i32) -> (i32, i32, i32) {
    %c0_i32 = arith.constant 0 : i32
    %c0_i32_0 = arith.constant 0 : i32
    %c0_i32_1 = arith.constant 0 : i32
    return %arg0, %c0_i32, %c0_i32_0 : i32, i32, i32
  }
  func.func @transform_5(%arg0: i32) -> (i32, i32, i32) {
    %c0_i32 = arith.constant 0 : i32
    %c0_i32_0 = arith.constant 0 : i32
    %c0_i32_1 = arith.constant 0 : i32
    return %arg0, %c0_i32, %c0_i32_0 : i32, i32, i32
  }
  func.func @transform_6(%arg0: i32) -> (i32, i32, i32) {
    %c0_i32 = arith.constant 0 : i32
    %c0_i32_0 = arith.constant 0 : i32
    %c0_i32_1 = arith.constant 0 : i32
    return %arg0, %c0_i32, %c0_i32_0 : i32, i32, i32
  }
  func.func @transform_7(%arg0: i32) -> (i32, i32, i32) {
    %c0_i32 = arith.constant 0 : i32
    %c0_i32_0 = arith.constant 0 : i32
    %c0_i32_1 = arith.constant 0 : i32
    return %arg0, %c0_i32, %c0_i32_0 : i32, i32, i32
  }
  func.func @transform_8(%arg0: i32) -> (i32, i32, i32) {
    %c0_i32 = arith.constant 0 : i32
    %c0_i32_0 = arith.constant 0 : i32
    %c0_i32_1 = arith.constant 0 : i32
    return %arg0, %c0_i32, %c0_i32_0 : i32, i32, i32
  }
  func.func @transform_9(%arg0: i32) -> (i32, i32, i32) {
    %c0_i32 = arith.constant 0 : i32
    %c0_i32_0 = arith.constant 0 : i32
    %c0_i32_1 = arith.constant 0 : i32
    return %arg0, %c0_i32, %c0_i32_0 : i32, i32, i32
  }
}

</mosaic_0001>

<bundles_post_ra>
// kernel: causal_gin_forward.5
= control target key start
LH: loop header
LB: loop body
LE: loop exit
PB: predicated region body
PF: predicated region fallthrough
CT: control target
= control target key end

     0   :  { %vm74_vm0 = vcmask 1043456   ;;  %vm22_vm1 = vcmask 64512   ;;  %v144_v0 = vmov 0.0   ;;  %vm145_vm2 = vmmov 0   ;;  %s197_s3 = inlined_call_operand.vmem [shape: bf16[8,32], index: 3, kind: input, shape index: {}]   ;;  %s198_s0 = inlined_call_operand.vmem [shape: f32[12,8], index: 0, kind: input, shape index: {}]   ;;  %s199_s1 = inlined_call_operand.vmem [shape: f32[1,8], index: 1, kind: input, shape index: {}]   ;;  %s200_s2 = inlined_call_operand.vmem [shape: f32[1,8], index: 2, kind: input, shape index: {}]   ;;  %s201_s4 = inlined_call_operand.vmem [shape: f32[12,32], index: 4, kind: output, shape index: {}]  }
   0x1   :  { %134 = vmatprep.subr.bf16.mxu0 %v144_v0  ;;  %v70_v1 = vld [vmem:[%s197_s3] sm:$0xf]  ;;  %136 = vmatprep.mubr.msk.bf16.mxu0 %vm145_vm2, %v144_v0  ;;  %v19_v3 = vld [vmem:[%s198_s0 + $0x8] sm:$0xf]  ;;  %vm24_vm3 = vcmask 60416   ;;  %vm121_vm4 = vcmask 261120  }
   0x2   :  { %v18_v2 = vld [vmem:[%s198_s0] sm:$0xff]  ;;  %v76_v4 = vsel %vm74_vm0, %v70_v1, 0  ;;  %v25_v6 = vsel %vm24_vm3, %v19_v3, 0.0  ;;  %vm123_vm5 = vcmask 257024  }
   0x3   :  { %v23_v5 = vsel %vm22_vm1, %v18_v2, 0.0  ;;  %135 = vmatpush3.bf16.msra.mxu0 %v76_v4  ;;  %v129_v31 = vld [vmem:[%s199_s1] ss:$0 sm:$0xff] }
   0x4   :  { %v26_v7 = vadd.f32 %v25_v6, %v23_v5  ;;  %v130_v34 = vld [vmem:[%s200_s2] ss:$0 sm:$0xff] }
   0x6   :  { %v27_v8 = vrot.slane %v26_v7, 4 }
   0x8   :  { %v28_v9 = vadd.f32 %v27_v8, %v26_v7 }
   0xa   :  { %v29_v10 = vrot.slane %v28_v9, 2 }
   0xc   :  { %v30_v11 = vadd.f32 %v29_v10, %v28_v9 }
   0xe   :  { %v31_v12 = vrot.slane %v30_v11, 1 }
  0x10   :  { %v32_v13 = vadd.f32 %v31_v12, %v30_v11 }
  0x12   :  { %v34_v14 = vmul.f32 0.083333336, %v32_v13 }
  0x14   :  { %v35_v15 = vsub.f32 %v18_v2, %v34_v14  ;;  %v36_v16 = vsub.f32 %v19_v3, %v34_v14 }
  0x16   :  { %v37_v17 = vmul.f32 %v35_v15, %v35_v15  ;;  %v38_v18 = vmul.f32 %v36_v16, %v36_v16 }
  0x18   :  { %v39_v19 = vsel %vm22_vm1, %v37_v17, 0.0  ;;  %v40_v20 = vsel %vm24_vm3, %v38_v18, 0.0 }
  0x19   :  { %v41_v21 = vadd.f32 %v40_v20, %v39_v19 }
  0x1b   :  { %v42_v22 = vrot.slane %v41_v21, 4 }
  0x1d   :  { %v43_v23 = vadd.f32 %v42_v22, %v41_v21 }
  0x1f   :  { %v44_v24 = vrot.slane %v43_v23, 2 }
  0x21   :  { %v45_v25 = vadd.f32 %v44_v24, %v43_v23 }
  0x23   :  { %v46_v26 = vrot.slane %v45_v25, 1 }
  0x25   :  { %v47_v27 = vadd.f32 %v46_v26, %v45_v25 }
  0x27   :  { %v48_v28 = vmul.f32 0.083333336, %v47_v27 }
  0x29   :  { %v49_v29 = vadd.f32 1e-05, %v48_v28 }
  0x2b   :  { %142 = vrsqrt.f32 %v49_v29 }
  0x35   :  { %v143_v30 = vpop.eup %142 }
  0x36   :  { %v51_v32 = vmul.f32 %v143_v30, %v35_v15  ;;  %v52_v33 = vmul.f32 %v143_v30, %v36_v16 }
  0x38   :  { %v59_v35 = vmul.f32 %v129_v31, %v51_v32  ;;  %v60_v36 = vmul.f32 %v129_v31, %v52_v33 }
  0x3a   :  { %v67_v37 = vadd.f32 %v130_v34, %v59_v35  ;;  %v68_v38 = vadd.f32 %v130_v34, %v60_v36 }
  0x3c   :  { %v69_v39 = vpack.c.bf16 %v68_v38, %v67_v37 }
  0x3e   :  { %137 = vmatmul.mubr.msk.bf16.vlgmr.msra.gmra.mrb[0].mxu0 %vm22_vm1, %v69_v39 }
 0x111   :  { %v112_v40 = vpop.f32.mrb[0].mxu0 }
 0x112   :  { %v119_v41 = vmax.f32 %v112_v40, 0.0  ;;  %v138_v42 = vpop.f32.mrb[1].mxu0 }
 0x113   :  { %v115_v43 = vpop.f32.mrb[2].mxu0 }
 0x114   :  { %122 = vst.msk [vmem:[%s201_s4] sm:$0xff] %vm121_vm4, %v119_v41  ;;  %v120_v44 = vmax.f32 %v115_v43, 0.0  ;;  %v139_v45 = vpop.f32.mrb[3].mxu0 }
 0x116   :  { %124 = vst.msk [vmem:[%s201_s4 + $0x8] sm:$0xf] %vm123_vm5, %v120_v44 }

// kernel: causal_gin_forward.6
= control target key start
LH: loop header
LB: loop body
LE: loop exit
PB: predicated region body
PF: predicated region fallthrough
CT: control target
= control target key end

     0   :  { %v633_v0 = vmov 0.0   ;;  %vm44_vm0 = vcmask 1045504   ;;  %vm634_vm1 = vmmov 0   ;;  %vm40_vm2 = vcmask 97280   ;;  %s787_s1 = inlined_call_operand.vmem [shape: f32[12,32], index: 1, kind: input, shape index: {}]   ;;  %s788_s0 = inlined_call_operand.vmem [shape: bf16[12,12], index: 0, kind: input, shape index: {}]   ;;  %s789_s2 = inlined_call_operand.vmem [shape: bf16[2,32,32], index: 2, kind: input, shape index: {}]   ;;  %s790_s6 = inlined_call_operand.vmem [shape: bf16[2,32,32], index: 6, kind: input, shape index: {}]   ;;  %s791_s3 = inlined_call_operand.vmem [shape: f32[2,1,32], index: 3, kind: input, shape index: {}]   ;;  %s792_s4 = inlined_call_operand.vmem [shape: f32[2,1,32], index: 4, kind: input, shape index: {}]   ;;  %s793_s5 = inlined_call_operand.vmem [shape: f32[2,1,32], index: 5, kind: input, shape index: {}]   ;;  %s794_s7 = inlined_call_operand.vmem [shape: f32[2,1,32], index: 7, kind: input, shape index: {}]   ;;  %s795_s8 = inlined_call_operand.vmem [shape: f32[12,32], index: 8, kind: output, shape index: {}]  }
   0x1   :  { %574 = vmatprep.subr.bf16.mxu0 %v633_v0  ;;  %v32_v1 = vld [vmem:[%s787_s1] sm:$0xff]  ;;  %v33_v2 = vld [vmem:[%s787_s1 + $0x8] sm:$0xf]  ;;  %576 = vmatprep.mubr.msk.bf16.mxu0 %vm634_vm1, %v633_v0  ;;  %vm113_vm3 = vcmask 261120   ;;  %vm161_vm4 = vcmask 257024  }
   0x2   :  { %v34_v3 = vpack.c.bf16 %v33_v2, %v32_v1  ;;  %v692_v4 = vld [vmem:[%s788_s0] sm:$0x3f]   ;;  %580 = vmatprep.subr.bf16.mxu1 %v633_v0  ;;  %584 = vmatprep.mubr.msk.bf16.mxu1 %vm634_vm1, %v633_v0  ;;  %v622_v7 = vld [vmem:[%s789_s2 + $0x8] sm:$0xff]  }
   0x3   :  { %v621_v5 = vld [vmem:[%s789_s2] sm:$0xff]   ;;  %v624_v14 = vld [vmem:[%s790_s6 + $0x8] sm:$0xff]  }
   0x4   :  { %v46_v6 = vsel %vm44_vm0, %v34_v3, 0  ;;  %581 = vmatpush3.bf16.msra.mxu1 %v621_v5  ;;  %v623_v13 = vld [vmem:[%s790_s6] sm:$0xff]  }
   0x5   :  { %575 = vmatpush3.bf16.msra.mxu0 %v46_v6  ;;  %582 = vmatprep.subr.bf16.mxu1 %v633_v0  ;;  %v525_v15 = vld [vmem:[%s791_s3] ss:$0 sm:$0xff] }
   0x6   :  { %588 = vmatprep.subr.bf16.mxu0 %v633_v0  ;;  %v529_v48 = vld [vmem:[%s792_s4] ss:$0 sm:$0xff] }
   0x7   :  { %v530_v51 = vld [vmem:[%s793_s5] ss:$0 sm:$0xff] }
   0x8   :  { %577 = vmatmul.mubr.msk.bf16.vlgmr.msra.gmra.mrb[0].mxu0 %vm40_vm2, %v692_v4  ;;  %583 = vmatpush3.bf16.msra.mxu1 %v622_v7  ;;  %v531_v59 = vld [vmem:[%s794_s7] ss:$0 sm:$0xff] }
   0x9   :  { %592 = vmatprep.mubr.msk.bf16.mxu0 %vm634_vm1, %v633_v0  ;;  %596 = vmatprep.subr.bf16.mxu1 %v633_v0 }
   0xa   :  { %589 = vmatpush3.bf16.msra.mxu0 %v623_v13 }
   0xb   :  { %590 = vmatprep.subr.bf16.mxu0 %v633_v0 }
   0xe   :  { %591 = vmatpush3.bf16.msra.mxu0 %v624_v14 }
   0xf   :  { %602 = vmatprep.subr.bf16.mxu0 %v633_v0 }
  0xdb   :  { %v82_v8 = vpop.f32.mrb[0].mxu0 }
  0xdc   :  { %v578_v9 = vpop.f32.mrb[1].mxu0 }
  0xdd   :  { %v85_v10 = vpop.f32.mrb[2].mxu0  ;;  %v626_v9 = vld [vmem:[%s789_s2 + $0x18] sm:$0xff]  }
  0xde   :  { %v89_v11 = vpack.c.bf16 %v85_v10, %v82_v8  ;;  %v579_v12 = vpop.f32.mrb[3].mxu0  ;;  %v625_v8 = vld [vmem:[%s789_s2 + $0x10] sm:$0xff]  }
  0xe0   :  { %585 = vmatmul.mubr.msk.bf16.vlgmr.msra.gmra.mrb[0].mxu1 %vm113_vm3, %v89_v11 }
  0xe1   :  { %598 = vmatprep.mubr.msk.bf16.mxu1 %vm634_vm1, %v633_v0 }
 0x1b3   :  { %v151_v16 = vpop.f32.mrb[0].mxu1 }
 0x1b4   :  { %v152_v17 = vadd.f32 %v525_v15, %v151_v16  ;;  %v586_v18 = vpop.f32.mrb[1].mxu1  ;;  %v627_v16 = vld [vmem:[%s790_s6 + $0x10] sm:$0xff]  }
 0x1b5   :  { %v154_v19 = vpop.f32.mrb[2].mxu1  ;;  %v541_v18 = vld [vmem:[%s791_s3 + $0x1] ss:$0 sm:$0xff] }
 0x1b6   :  { %v155_v20 = vadd.f32 %v525_v15, %v154_v19  ;;  %v587_v21 = vpop.f32.mrb[3].mxu1  ;;  %v160_v22 = vsel %vm113_vm3, %v152_v17, 0.0 }
 0x1b8   :  { %v162_v23 = vsel %vm161_vm4, %v155_v20, 0.0 }
 0x1b9   :  { %v163_v24 = vadd.f32 %v162_v23, %v160_v22 }
 0x1bb   :  { %v164_v25 = vrot.slane %v163_v24, 4 }
 0x1bd   :  { %v165_v26 = vadd.f32 %v164_v25, %v163_v24 }
 0x1bf   :  { %v166_v27 = vrot.slane %v165_v26, 2 }
 0x1c1   :  { %v167_v28 = vadd.f32 %v166_v27, %v165_v26 }
 0x1c3   :  { %v168_v29 = vrot.slane %v167_v28, 1 }
 0x1c5   :  { %v169_v30 = vadd.f32 %v168_v29, %v167_v28 }
 0x1c7   :  { %v171_v31 = vmul.f32 0.083333336, %v169_v30 }
 0x1c9   :  { %v172_v32 = vsub.f32 %v152_v17, %v171_v31  ;;  %v173_v33 = vsub.f32 %v155_v20, %v171_v31  ;;  %v628_v17 = vld [vmem:[%s790_s6 + $0x18] sm:$0xff]  }
 0x1cb   :  { %v174_v34 = vmul.f32 %v172_v32, %v172_v32  ;;  %v175_v35 = vmul.f32 %v173_v33, %v173_v33 }
 0x1cd   :  { %v176_v36 = vsel %vm113_vm3, %v174_v34, 0.0  ;;  %v177_v37 = vsel %vm161_vm4, %v175_v35, 0.0 }
 0x1ce   :  { %v178_v38 = vadd.f32 %v177_v37, %v176_v36 }
 0x1d0   :  { %v179_v39 = vrot.slane %v178_v38, 4 }
 0x1d2   :  { %v180_v40 = vadd.f32 %v179_v39, %v178_v38 }
 0x1d4   :  { %v181_v41 = vrot.slane %v180_v40, 2 }
 0x1d6   :  { %v182_v42 = vadd.f32 %v181_v41, %v180_v40 }
 0x1d8   :  { %v183_v43 = vrot.slane %v182_v42, 1 }
 0x1da   :  { %v184_v44 = vadd.f32 %v183_v43, %v182_v42 }
 0x1dc   :  { %v185_v45 = vmul.f32 0.083333336, %v184_v44 }
 0x1de   :  { %v186_v46 = vadd.f32 1e-05, %v185_v45 }
 0x1e0   :  { %629 = vrsqrt.f32 %v186_v46 }
 0x1ea   :  { %v630_v47 = vpop.eup %629 }
 0x1eb   :  { %v188_v49 = vmul.f32 %v630_v47, %v172_v32  ;;  %v189_v50 = vmul.f32 %v630_v47, %v173_v33 }
 0x1ed   :  { %v196_v52 = vmul.f32 %v529_v48, %v188_v49  ;;  %v197_v53 = vmul.f32 %v529_v48, %v189_v50  ;;  %v547_v50 = vld [vmem:[%s792_s4 + $0x1] ss:$0 sm:$0xff] }
 0x1ef   :  { %v204_v54 = vadd.f32 %v530_v51, %v196_v52  ;;  %v205_v55 = vadd.f32 %v530_v51, %v197_v53  ;;  %v548_v53 = vld [vmem:[%s793_s5 + $0x1] ss:$0 sm:$0xff] }
 0x1f1   :  { %v206_v56 = vmax.f32 %v204_v54, 0.0  ;;  %v207_v57 = vmax.f32 %v205_v55, 0.0 }
 0x1f3   :  { %v208_v58 = vpack.c.bf16 %v207_v57, %v206_v56 }
 0x1f5   :  { %593 = vmatmul.mubr.msk.bf16.vlgmr.msra.gmra.mrb[4].mxu0 %vm113_vm3, %v208_v58 }
 0x1f6   :  { %606 = vmatprep.mubr.msk.bf16.mxu0 %vm634_vm1, %v633_v0  ;;  %603 = vmatpush3.bf16.msra.mxu0 %v625_v8 }
 0x1f7   :  { %604 = vmatprep.subr.bf16.mxu0 %v633_v0 }
 0x1fa   :  { %605 = vmatpush3.bf16.msra.mxu0 %v626_v9 }
 0x2c8   :  { %v269_v60 = vpop.f32.mrb[4].mxu0 }
 0x2c9   :  { %v270_v61 = vadd.f32 %v531_v59, %v269_v60  ;;  %v594_v62 = vpop.f32.mrb[5].mxu0 }
 0x2ca   :  { %v272_v63 = vpop.f32.mrb[6].mxu0 }
 0x2cb   :  { %v273_v1 = vadd.f32 %v531_v59, %v272_v63  ;;  %v595_v2 = vpop.f32.mrb[7].mxu0  ;;  %v276_v3 = vmax.f32 %v270_v61, 0.0  ;;  %v554_v61 = vld [vmem:[%s794_s7 + $0x1] ss:$0 sm:$0xff] }
 0x2cd   :  { %v277_v5 = vmax.f32 %v273_v1, 0.0 }
 0x2cf   :  { %v278_v6 = vpack.c.bf16 %v277_v5, %v276_v3 }
 0x2d1   :  { %v280_v7 = vsel %vm44_vm0, %v278_v6, 0 }
 0x2d2   :  { %597 = vmatpush3.bf16.msra.mxu1 %v280_v7 }
 0x2d3   :  { %610 = vmatprep.subr.bf16.mxu1 %v633_v0 }
 0x2d5   :  { %599 = vmatmul.mubr.msk.bf16.vlgmr.msra.gmra.mrb[4].mxu1 %vm40_vm2, %v692_v4 }
 0x2d6   :  { %614 = vmatprep.mubr.msk.bf16.mxu1 %vm634_vm1, %v633_v0  ;;  %611 = vmatpush3.bf16.msra.mxu1 %v627_v16 }
 0x2d7   :  { %612 = vmatprep.subr.bf16.mxu1 %v633_v0 }
 0x2da   :  { %613 = vmatpush3.bf16.msra.mxu1 %v628_v17 }
 0x3a8   :  { %v316_v10 = vpop.f32.mrb[4].mxu1 }
 0x3a9   :  { %v600_v11 = vpop.f32.mrb[5].mxu1  ;;  %v323_v13 = vmul.f32 2.0, %v316_v10 }
 0x3aa   :  { %v319_v12 = vpop.f32.mrb[6].mxu1 }
 0x3ab   :  { %v324_v4 = vmul.f32 2.0, %v319_v12  ;;  %v601_v14 = vpop.f32.mrb[7].mxu1 }
 0x3ad   :  { %v325_v15 = vpack.c.bf16 %v324_v4, %v323_v13 }
 0x3af   :  { %607 = vmatmul.mubr.msk.bf16.vlgmr.msra.gmra.mrb[8].mxu0 %vm113_vm3, %v325_v15 }
 0x482   :  { %v388_v19 = vpop.f32.mrb[8].mxu0 }
 0x483   :  { %v389_v20 = vadd.f32 %v541_v18, %v388_v19  ;;  %v608_v21 = vpop.f32.mrb[9].mxu0 }
 0x484   :  { %v391_v22 = vpop.f32.mrb[10].mxu0 }
 0x485   :  { %v392_v23 = vadd.f32 %v541_v18, %v391_v22  ;;  %v609_v24 = vpop.f32.mrb[11].mxu0  ;;  %v399_v25 = vsel %vm113_vm3, %v389_v20, 0.0 }
 0x487   :  { %v400_v26 = vsel %vm161_vm4, %v392_v23, 0.0 }
 0x488   :  { %v401_v0 = vadd.f32 %v400_v26, %v399_v25 }
 0x48a   :  { %v402_v27 = vrot.slane %v401_v0, 4 }
 0x48c   :  { %v403_v28 = vadd.f32 %v402_v27, %v401_v0 }
 0x48e   :  { %v404_v29 = vrot.slane %v403_v28, 2 }
 0x490   :  { %v405_v30 = vadd.f32 %v404_v29, %v403_v28 }
 0x492   :  { %v406_v31 = vrot.slane %v405_v30, 1 }
 0x494   :  { %v407_v32 = vadd.f32 %v406_v31, %v405_v30 }
 0x496   :  { %v408_v33 = vmul.f32 0.083333336, %v407_v32 }
 0x498   :  { %v409_v34 = vsub.f32 %v389_v20, %v408_v33  ;;  %v410_v35 = vsub.f32 %v392_v23, %v408_v33 }
 0x49a   :  { %v411_v36 = vmul.f32 %v409_v34, %v409_v34  ;;  %v412_v37 = vmul.f32 %v410_v35, %v410_v35 }
 0x49c   :  { %v413_v38 = vsel %vm113_vm3, %v411_v36, 0.0  ;;  %v414_v39 = vsel %vm161_vm4, %v412_v37, 0.0 }
 0x49d   :  { %v415_v40 = vadd.f32 %v414_v39, %v413_v38 }
 0x49f   :  { %v416_v41 = vrot.slane %v415_v40, 4 }
 0x4a1   :  { %v417_v42 = vadd.f32 %v416_v41, %v415_v40 }
 0x4a3   :  { %v418_v43 = vrot.slane %v417_v42, 2 }
 0x4a5   :  { %v419_v44 = vadd.f32 %v418_v43, %v417_v42 }
 0x4a7   :  { %v420_v45 = vrot.slane %v419_v44, 1 }
 0x4a9   :  { %v421_v46 = vadd.f32 %v420_v45, %v419_v44 }
 0x4ab   :  { %v422_v47 = vmul.f32 0.083333336, %v421_v46 }
 0x4ad   :  { %v423_v48 = vadd.f32 1e-05, %v422_v47 }
 0x4af   :  { %631 = vrsqrt.f32 %v423_v48 }
 0x4b9   :  { %v632_v49 = vpop.eup %631 }
 0x4ba   :  { %v425_v51 = vmul.f32 %v632_v49, %v409_v34  ;;  %v426_v52 = vmul.f32 %v632_v49, %v410_v35 }
 0x4bc   :  { %v433_v54 = vmul.f32 %v547_v50, %v425_v51  ;;  %v434_v55 = vmul.f32 %v547_v50, %v426_v52 }
 0x4be   :  { %v441_v56 = vadd.f32 %v548_v53, %v433_v54  ;;  %v442_v57 = vadd.f32 %v548_v53, %v434_v55 }
 0x4c0   :  { %v443_v58 = vmax.f32 %v441_v56, 0.0  ;;  %v444_v59 = vmax.f32 %v442_v57, 0.0 }
 0x4c2   :  { %v445_v60 = vpack.c.bf16 %v444_v59, %v443_v58 }
 0x4c4   :  { %615 = vmatmul.mubr.msk.bf16.vlgmr.msra.gmra.mrb[8].mxu1 %vm113_vm3, %v445_v60 }
 0x597   :  { %v508_v62 = vpop.f32.mrb[8].mxu1 }
 0x598   :  { %v509_v63 = vadd.f32 %v554_v61, %v508_v62  ;;  %v616_v1 = vpop.f32.mrb[9].mxu1 }
 0x599   :  { %v511_v2 = vpop.f32.mrb[10].mxu1 }
 0x59a   :  { %v515_v3 = vmax.f32 %v509_v63, 0.0  ;;  %v512_v5 = vadd.f32 %v554_v61, %v511_v2  ;;  %v617_v6 = vpop.f32.mrb[11].mxu1 }
 0x59c   :  { %517 = vst.msk [vmem:[%s795_s8] sm:$0xff] %vm113_vm3, %v515_v3  ;;  %v516_v7 = vmax.f32 %v512_v5, 0.0 }
 0x59e   :  { %518 = vst.msk [vmem:[%s795_s8 + $0x8] sm:$0xf] %vm161_vm4, %v516_v7 }

// kernel: causal_gin_forward.7
= control target key start
LH: loop header
LB: loop body
LE: loop exit
PB: predicated region body
PF: predicated region fallthrough
CT: control target
= control target key end

     0   :  { %v358_v0 = vmov 0.0   ;;  %vm359_vm0 = vmmov 0   ;;  %vm54_vm1 = vcmask 261120   ;;  %vm99_vm2 = vcmask 15360   ;;  %s489_s1 = inlined_call_operand.vmem [shape: bf16[32,2], index: 1, kind: input, shape index: {}]   ;;  %s490_s0 = inlined_call_operand.vmem [shape: f32[12,32], index: 0, kind: input, shape index: {}]   ;;  %s491_s2 = inlined_call_operand.vmem [shape: f32[1,2], index: 2, kind: input, shape index: {}]   ;;  %s492_s3 = inlined_call_operand.vmem [shape: bf16[32,2], index: 3, kind: input, shape index: {}]   ;;  %s493_s4 = inlined_call_operand.vmem [shape: bf16[32,2], index: 4, kind: input, shape index: {}]   ;;  %s494_s5 = inlined_call_operand.vmem [shape: f32[1,2], index: 5, kind: input, shape index: {}]   ;;  %s495_s8 = inlined_call_operand.vmem [shape: f32[12,2], index: 8, kind: output, shape index: {2}]   ;;  %s496_s9 = inlined_call_operand.vmem [shape: f32[12,2], index: 9, kind: output, shape index: {3}]   ;;  %s497_s7 = inlined_call_operand.vmem [shape: f32[12,32], index: 7, kind: output, shape index: {1}]   ;;  %s498_s6 = inlined_call_operand.vmem [shape: f32[12,32], index: 6, kind: output, shape index: {0}]  }
   0x1   :  { %311 = vmatprep.subr.bf16.mxu0 %v358_v0  ;;  %v344_v1 = vld [vmem:[%s489_s1] sm:$0xff]   ;;  %315 = vmatprep.mubr.msk.bf16.mxu0 %vm359_vm0, %v358_v0  ;;  %v345_v2 = vld [vmem:[%s489_s1 + $0x8] sm:$0xff]   ;;  %vm103_vm3 = vcmask 11264   ;;  %v360_v29 = vmov 1   ;;  %v361_v30 = vmov 0   ;;  %vm136_vm4 = vcmask 257024  }
   0x2   :  { %319 = vmatprep.subr.bf16.mxu1 %v358_v0  ;;  %323 = vmatprep.mubr.msk.bf16.mxu1 %vm359_vm0, %v358_v0  ;;  %v421_v3 = vld [vmem:[%s490_s0] sm:$0xff]  ;;  %v426_v4 = vld [vmem:[%s490_s0 + $0x8] sm:$0xf] }
   0x3   :  { %312 = vmatpush3.bf16.msra.mxu0 %v344_v1  ;;  %v30_v5 = vpack.c.bf16 %v426_v4, %v421_v3  ;;  %v291_v6 = vld [vmem:[%s491_s2] ss:$0 sm:$0xff]  ;;  %v348_v17 = vld [vmem:[%s492_s3 + $0x8] sm:$0xff]   ;;  %340 = vset.pattern.permute.xlu1 %v360_v29 }
   0x4   :  { %313 = vmatprep.subr.bf16.mxu0 %v358_v0  ;;  %v346_v15 = vld [vmem:[%s492_s3] sm:$0xff]   ;;  %v349_v18 = vld [vmem:[%s493_s4 + $0x8] sm:$0xff]   ;;  %339 = vset.pattern.permute.xlu0 %v361_v30 }
   0x5   :  { %v347_v16 = vld [vmem:[%s493_s4] sm:$0xff]   ;;  %320 = vmatpush3.bf16.msra.mxu1 %v346_v15 }
   0x6   :  { %321 = vmatprep.subr.bf16.mxu1 %v358_v0  ;;  %v295_v38 = vld [vmem:[%s494_s5] ss:$0 sm:$0xff] }
   0x7   :  { %314 = vmatpush3.bf16.msra.mxu0 %v345_v2 }
   0x8   :  { %327 = vmatprep.subr.bf16.mxu0 %v358_v0 }
   0x9   :  { %322 = vmatpush3.bf16.msra.mxu1 %v348_v17 }
   0xa   :  { %316 = vmatmul.mubr.msk.bf16.vlgmr.msra.gmra.mrb[0].mxu0 %vm54_vm1, %v30_v5 }
   0xb   :  { %331 = vmatprep.mubr.msk.bf16.mxu0 %vm359_vm0, %v358_v0  ;;  %328 = vmatpush3.bf16.msra.mxu0 %v347_v16 }
   0xc   :  { %329 = vmatprep.subr.bf16.mxu0 %v358_v0  ;;  %324 = vmatmul.mubr.msk.bf16.vlgmr.msra.gmra.mrb[0].mxu1 %vm54_vm1, %v30_v5 }
   0xf   :  { %330 = vmatpush3.bf16.msra.mxu0 %v349_v18 }
  0x12   :  { %332 = vmatmul.mubr.msk.bf16.vlgmr.msra.gmra.mrb[4].mxu0 %vm54_vm1, %v30_v5 }
  0xdd   :  { %v92_v7 = vpop.f32.mrb[0].mxu0 }
  0xde   :  { %v93_v8 = vadd.f32 %v291_v6, %v92_v7  ;;  %v317_v9 = vpop.f32.mrb[1].mxu0 }
  0xdf   :  { %v95_v10 = vpop.f32.mrb[2].mxu0  ;;  %v207_v37 = vpop.f32.mrb[0].mxu1 }
  0xe0   :  { %v96_v11 = vadd.f32 %v291_v6, %v95_v10  ;;  %v318_v12 = vpop.f32.mrb[3].mxu0  ;;  %v100_v13 = vsel %vm99_vm2, %v93_v8, -inf  ;;  %v325_v39 = vpop.f32.mrb[1].mxu1  ;;  %v208_v40 = vadd.f32 %v295_v38, %v207_v37 }
  0xe1   :  { %101 = vmax.xlane.f32.xlu0 %v100_v13  ;;  %v210_v41 = vpop.f32.mrb[2].mxu1 }
  0xe2   :  { %v104_v14 = vsel %vm103_vm3, %v96_v11, -inf  ;;  %214 = vst.msk [vmem:[%s495_s8] sm:$0xff] %vm99_vm2, %v208_v40  ;;  %v211_v43 = vadd.f32 %v295_v38, %v210_v41  ;;  %v326_v44 = vpop.f32.mrb[3].mxu1 }
  0xe4   :  { %215 = vst.msk [vmem:[%s495_s8 + $0x8] sm:$0xf] %vm103_vm3, %v211_v43 }
  0xe5   :  { %105 = vmax.xlane.f32.xlu0 %v104_v14  ;;  %v266_v42 = vpop.f32.mrb[4].mxu0 }
  0xe6   :  { %v333_v45 = vpop.f32.mrb[5].mxu0  ;;  %273 = vst.msk [vmem:[%s496_s9] sm:$0xff] %vm99_vm2, %v266_v42 }
  0xe7   :  { %v269_v46 = vpop.f32.mrb[6].mxu0 }
  0xe8   :  { %274 = vst.msk [vmem:[%s496_s9 + $0x8] sm:$0xf] %vm103_vm3, %v269_v46  ;;  %v334_v47 = vpop.f32.mrb[7].mxu0 }
 0x16e   :  { %v102_v19 = vpop.xlane.xlu0 %101 }
 0x16f   :  { %v107_v20 = vsub.f32 %v93_v8, %v102_v19 }
 0x171   :  { %v109_v21 = vmul.f32 1.442695, %v107_v20 }
 0x172   :  { %v106_v22 = vpop.xlane.xlu0 %105 }
 0x173   :  { %350 = vpow2.f32 %v109_v21  ;;  %v108_v23 = vsub.f32 %v96_v11, %v106_v22 }
 0x175   :  { %v111_v24 = vmul.f32 1.442695, %v108_v23 }
 0x177   :  { %352 = vpow2.f32 %v111_v24 }
 0x17d   :  { %v351_v25 = vpop.eup %350 }
 0x17e   :  { %v113_v26 = vsel %vm99_vm2, %v351_v25, 0.0 }
 0x17f   :  { %114 = vadd.xlane.f32.xlu1 %v113_v26 }
 0x181   :  { %v353_v27 = vpop.eup %352 }
 0x182   :  { %v116_v28 = vsel %vm103_vm3, %v353_v27, 0.0 }
 0x183   :  { %117 = vadd.xlane.f32.xlu1 %v116_v28 }
 0x20c   :  { %v115_v31 = vpop.xlane.xlu1 %114 }
 0x20d   :  { %354 = vrcp.f32 %v115_v31 }
 0x210   :  { %v118_v32 = vpop.xlane.xlu1 %117 }
 0x211   :  { %356 = vrcp.f32 %v118_v32 }
 0x217   :  { %v355_v33 = vpop.eup %354 }
 0x218   :  { %v121_v34 = vmul.f32 %v355_v33, %v351_v25 }
 0x21a   :  { %125 = vperm.xlu0 %339, %v121_v34   ;;  %139 = vperm.xlu1 %340, %v121_v34  }
 0x21b   :  { %v357_v35 = vpop.eup %356 }
 0x21c   :  { %v122_v36 = vmul.f32 %v357_v35, %v353_v27 }
 0x21e   :  { %341 = vset.pattern.permute.xlu1 %v361_v30  ;;  %343 = vset.pattern.permute.xlu0 %v360_v29 }
 0x21f   :  { %130 = vperm.xlu1 %341, %v122_v36  }
 0x223   :  { %342 = vset.pattern.permute.xlu1 %v360_v29 }
 0x224   :  { %143 = vperm.xlu1 %342, %v122_v36  }
 0x299   :  { %v140_v48 = vpop.permute.xlu1 %139  ;;  %v126_v49 = vpop.permute.xlu0 %125 }
 0x29a   :  { %v146_v50 = vmul.f32 %v140_v48, %v421_v3  ;;  %v133_v51 = vmul.f32 %v126_v49, %v421_v3 }
 0x29c   :  { %148 = vst.msk [vmem:[%s497_s7] sm:$0xff] %vm54_vm1, %v146_v50  ;;  %135 = vst.msk [vmem:[%s498_s6] sm:$0xff] %vm54_vm1, %v133_v51 }
 0x29e   :  { %v131_v52 = vpop.permute.xlu1 %130 }
 0x29f   :  { %v134_v53 = vmul.f32 %v131_v52, %v426_v4 }
 0x2a1   :  { %137 = vst.msk [vmem:[%s498_s6 + $0x8] sm:$0xf] %vm136_vm4, %v134_v53 }
 0x2a3   :  { %v144_v54 = vpop.permute.xlu1 %143 }
 0x2a4   :  { %v147_v55 = vmul.f32 %v144_v54, %v426_v4 }
 0x2a6   :  { %149 = vst.msk [vmem:[%s497_s7 + $0x8] sm:$0xf] %vm136_vm4, %v147_v55 }

// kernel: causal_gin_forward.8
= control target key start
LH: loop header
LB: loop body
LE: loop exit
PB: predicated region body
PF: predicated region fallthrough
CT: control target
= control target key end

     0   :  { %s810_s24 = smov 0   ;;  %s872_s0 = inlined_call_operand.vmem [shape: f32[2,12,32], index: 0, kind: input, shape index: {}]   ;;  %s873_s1 = inlined_call_operand.vmem [shape: f32[2,1,32], index: 1, kind: input, shape index: {}]   ;;  %s874_s2 = inlined_call_operand.vmem [shape: f32[2,1,32], index: 2, kind: input, shape index: {}]   ;;  %s875_s3 = inlined_call_operand.vmem [shape: bf16[2,32,32], index: 3, kind: input, shape index: {}]   ;;  %s876_s4 = inlined_call_operand.vmem [shape: bf16[2,12,12], index: 4, kind: input, shape index: {}]   ;;  %s877_s5 = inlined_call_operand.vmem [shape: f32[2,1,32], index: 5, kind: input, shape index: {}]   ;;  %s878_s6 = inlined_call_operand.vmem [shape: bf16[2,12], index: 6, kind: input, shape index: {}]   ;;  %s879_s7 = inlined_call_operand.vmem [shape: f32[2,2,32], index: 7, kind: output, shape index: {}]  }
   0x1 LB: > { %s692_s25 = sadd.s32 4294967295, %s766_s24   ;;  %p696_p0 = scmp.ge.s32.totalorder %s766_s24, 1  ;;  %s766_s24 = sphi %s810_s24, %s17_s24  }
   0x2   : > { %p281_p1 = scmp.lt.s32.totalorder %s766_s24, 3 }
   0x4   : > { %p282_p2 = pnand %p696_p0, %p281_p1 }
   0x5   : > { %p331_p3 = scmp.lt.s32.totalorder (!%p282_p2), %s692_s25, 1  ;;  %v768_v0 = vmov (!%p282_p2), 0.0   ;;  %vm769_vm0 = vmmov (!%p282_p2), 0   ;;  %vm364_vm1 = vcmask (!%p282_p2), 261120   ;;  %vm366_vm2 = vcmask (!%p282_p2), 257024  }
   0x6   : > { %285 = sbr.rel (%p282_p2) target bundleno = 736 (0x2e0), region = 48  ;;  %725 = vmatprep.subr.bf16.mxu0 (!%p282_p2), %v768_v0  ;;  %729 = vmatprep.mubr.msk.bf16.mxu0 (!%p282_p2), %vm769_vm0, %v768_v0  ;;  %vm491_vm3 = vcmask (!%p282_p2), 1045504   ;;  %vm487_vm4 = vcmask (!%p282_p2), 97280   ;;  %v538_v58 = vld [vmem:[%s878_s6] sm:$0x1] (!%p282_p2)  ;;  %vm586_vm5 = vcmask (!%p282_p2), 254976  }
   0x7   : > { %733 = vmatprep.subr.bf16.mxu1 (!%p282_p2), %v768_v0  ;;  %735 = vmatprep.mubr.msk.bf16.mxu1 (!%p282_p2), %vm769_vm0, %v768_v0 }
   0xd   : > { %s881_s25 = smov (!%p331_p3, %s692_s25), 1 }
   0xe   : > { %s715_s26 = sshll.u32 %s881_s25, 4  ;;  %s338_s12 = scalar_lea.vmem %s873_s1, %s881_s25 }
   0xf   : > { %s346_s29 = scalar_lea.vmem %s875_s3, %s715_s26  ;;  %s335_s9 = scalar_lea.vmem %s872_s0, %s715_s26  ;;  %v704_v31 = vld [vmem:[%s338_s12] ss:$0 sm:$0xff] }
  0x10   : > { %v755_v1 = vld [vmem:[%s346_s29] sm:$0xff]   ;;  %v756_v2 = vld [vmem:[%s346_s29 + $0x8] sm:$0xff]   ;;  %s341_s15 = scalar_lea.vmem %s874_s2, %s881_s25  ;;  %s717_s16 = sshll.u32 %s881_s25, 3 }
  0x11   : > { %726 = vmatpush3.bf16.msra.mxu0 %v755_v1  ;;  %v360_v3 = vld [vmem:[%s335_s9] sm:$0xff]  ;;  %v361_v4 = vld [vmem:[%s335_s9 + $0x8] sm:$0xf]  ;;  %s351_s19 = scalar_lea.vmem %s876_s4, %s717_s16  ;;  %s354_s22 = scalar_lea.vmem %s877_s5, %s881_s25 }
  0x12   : > { %727 = vmatprep.subr.bf16.mxu0 %v768_v0  ;;  %v365_v5 = vsel %vm364_vm1, %v360_v3, 0.0  ;;  %v367_v6 = vsel %vm366_vm2, %v361_v4, 0.0  ;;  %v705_v34 = vld [vmem:[%s341_s15] ss:$0 sm:$0xff]  ;;  %s703_s27 = sshll.u32 %s881_s25, 1 }
  0x13   : > { %v368_v7 = vadd.f32 %v367_v6, %v365_v5  ;;  %v757_v46 = vld [vmem:[%s351_s19] sm:$0x3f]   ;;  %s358_s30 = scalar_lea.vmem %s879_s7, %s703_s27 }
  0x14   : > { %v709_v47 = vld [vmem:[%s354_s22] ss:$0 sm:$0xff] }
  0x15   : > { %728 = vmatpush3.bf16.msra.mxu0 %v756_v2  ;;  %v369_v8 = vrot.slane %v368_v7, 4 }
  0x17   : > { %v370_v9 = vadd.f32 %v369_v8, %v368_v7 }
  0x19   : > { %v371_v10 = vrot.slane %v370_v9, 2 }
  0x1b   : > { %v372_v11 = vadd.f32 %v371_v10, %v370_v9 }
  0x1d   : > { %v373_v12 = vrot.slane %v372_v11, 1 }
  0x1f   : > { %v374_v13 = vadd.f32 %v373_v12, %v372_v11 }
  0x21   : > { %v376_v14 = vmul.f32 0.083333336, %v374_v13 }
  0x23   : > { %v377_v15 = vsub.f32 %v360_v3, %v376_v14  ;;  %v378_v16 = vsub.f32 %v361_v4, %v376_v14 }
  0x25   : > { %v379_v17 = vmul.f32 %v377_v15, %v377_v15  ;;  %v380_v18 = vmul.f32 %v378_v16, %v378_v16 }
  0x27   : > { %v381_v19 = vsel %vm364_vm1, %v379_v17, 0.0  ;;  %v382_v20 = vsel %vm366_vm2, %v380_v18, 0.0 }
  0x28   : > { %v383_v21 = vadd.f32 %v382_v20, %v381_v19 }
  0x2a   : > { %v384_v22 = vrot.slane %v383_v21, 4 }
  0x2c   : > { %v385_v23 = vadd.f32 %v384_v22, %v383_v21 }
  0x2e   : > { %v386_v24 = vrot.slane %v385_v23, 2 }
  0x30   : > { %v387_v25 = vadd.f32 %v386_v24, %v385_v23 }
  0x32   : > { %v388_v26 = vrot.slane %v387_v25, 1 }
  0x34   : > { %v389_v27 = vadd.f32 %v388_v26, %v387_v25 }
  0x36   : > { %v390_v28 = vmul.f32 0.083333336, %v389_v27 }
  0x38   : > { %v391_v29 = vadd.f32 1e-05, %v390_v28 }
  0x3a   : > { %758 = vrsqrt.f32 %v391_v29 }
  0x44   : > { %v759_v30 = vpop.eup %758 }
  0x45   : > { %v393_v32 = vmul.f32 %v759_v30, %v377_v15  ;;  %v394_v33 = vmul.f32 %v759_v30, %v378_v16 }
  0x47   : > { %v401_v35 = vmul.f32 %v704_v31, %v393_v32  ;;  %v402_v36 = vmul.f32 %v704_v31, %v394_v33 }
  0x49   : > { %v409_v37 = vadd.f32 %v705_v34, %v401_v35  ;;  %v410_v38 = vadd.f32 %v705_v34, %v402_v36 }
  0x4b   : > { %v411_v39 = vpack.c.bf16 %v410_v38, %v409_v37 }
  0x4d   : > { %730 = vmatmul.mubr.msk.bf16.vlgmr.msra.gmra.mrb[0].mxu0 %vm364_vm1, %v411_v39 }
 0x120   : > { %v465_v40 = vpop.f32.mrb[0].mxu0 }
 0x121   : > { %v731_v41 = vpop.f32.mrb[1].mxu0 }
 0x122   : > { %v468_v42 = vpop.f32.mrb[2].mxu0 }
 0x123   : > { %v474_v43 = vpack.c.bf16 %v468_v42, %v465_v40  ;;  %v732_v44 = vpop.f32.mrb[3].mxu0 }
 0x125   : > { %v493_v45 = vsel %vm491_vm3, %v474_v43, 0 }
 0x126   : > { %734 = vmatpush3.bf16.msra.mxu1 %v493_v45 }
 0x127   : > { %739 = vmatprep.subr.bf16.mxu1 %v768_v0 }
 0x129   : > { %736 = vmatmul.mubr.msk.bf16.vlgmr.msra.gmra.mrb[0].mxu1 %vm487_vm4, %v757_v46 }
 0x12a   : > { %741 = vmatprep.mubr.msk.bf16.mxu1 %vm769_vm0, %v768_v0 }
 0x1fc   : > { %v529_v48 = vpop.f32.mrb[0].mxu1 }
 0x1fd   : > { %v530_v49 = vadd.f32 %v709_v47, %v529_v48  ;;  %v737_v50 = vpop.f32.mrb[1].mxu1 }
 0x1fe   : > { %v532_v51 = vpop.f32.mrb[2].mxu1 }
 0x1ff   : > { %v533_v52 = vadd.f32 %v709_v47, %v532_v51  ;;  %v738_v53 = vpop.f32.mrb[3].mxu1  ;;  %v536_v54 = vmax.f32 %v530_v49, 0.0 }
 0x201   : > { %v537_v55 = vmax.f32 %v533_v52, 0.0 }
 0x203   : > { %v539_v56 = vpack.c.bf16 %v537_v55, %v536_v54 }
 0x205   : > { %v544_v57 = vsel %vm491_vm3, %v539_v56, 0 }
 0x206   : > { %740 = vmatpush3.bf16.msra.mxu1 %v544_v57 }
 0x209   : > { %742 = vmatmul.mubr.msk.bf16.vlgmr.msra.gmra.mrb[4].mxu1 %vm487_vm4, %v538_v58 }
 0x2dc   : > { %v580_v59 = vpop.f32.mrb[4].mxu1 }
 0x2dd   : > { %587 = vst.msk [vmem:[%s358_s30] sm:$0x3] %vm586_vm5, %v580_v59  ;;  %v743_v60 = vpop.f32.mrb[5].mxu1 }
 0x2de   : > { %v583_v61 = vpop.f32.mrb[6].mxu1 }
 0x2df   : > { %v744_v62 = vpop.f32.mrb[7].mxu1 }
 0x2e0 PF: > { %s17_s24 = sadd.s32 1, %s766_s24  }
 0x2e1   : > { %p14_p4 = scmp.ge.s32.totalorder %s17_s24, 4  }
 0x2e3   :  { %16 = sbr.rel (!%p14_p4) target bundleno = 1 (0x1), region = 93 }

// kernel: causal_gin_forward.9
= control target key start
LH: loop header
LB: loop body
LE: loop exit
PB: predicated region body
PF: predicated region fallthrough
CT: control target
= control target key end

     0   :  { %s942_s30 = smov 0   ;;  %s1010_s0 = inlined_call_operand.vmem [shape: f32[3,2,32], index: 0, kind: input, shape index: {}]   ;;  %s1011_s1 = inlined_call_operand.vmem [shape: f32[3,1,32], index: 1, kind: input, shape index: {}]   ;;  %s1012_s2 = inlined_call_operand.vmem [shape: f32[3,1,32], index: 2, kind: input, shape index: {}]   ;;  %s1013_s3 = inlined_call_operand.vmem [shape: bf16[3,32,32], index: 3, kind: input, shape index: {}]   ;;  %s1014_s4 = inlined_call_operand.vmem [shape: f32[3,1,32], index: 4, kind: input, shape index: {}]   ;;  %s1015_s5 = inlined_call_operand.vmem [shape: f32[3,1,32], index: 5, kind: input, shape index: {}]   ;;  %s1016_s6 = inlined_call_operand.vmem [shape: f32[3,1,32], index: 6, kind: input, shape index: {}]   ;;  %s1017_s7 = inlined_call_operand.vmem [shape: bf16[3,32,3], index: 7, kind: input, shape index: {}]   ;;  %s1018_s8 = inlined_call_operand.vmem [shape: f32[3,1,3], index: 8, kind: input, shape index: {}]   ;;  %s1019_s9 = inlined_call_operand.vmem [shape: f32[3,2,3], index: 9, kind: output, shape index: {}]  }
   0x1 LB: > { %s811_s10 = sadd.s32 4294967295, %s888_s30   ;;  %p815_p0 = scmp.ge.s32.totalorder %s888_s30, 1  ;;  %s888_s30 = sphi %s942_s30, %s19_s30  }
   0x2   : > { %p354_p1 = scmp.lt.s32.totalorder %s888_s30, 4 }
   0x4   : > { %p355_p2 = pnand %p815_p0, %p354_p1 }
   0x5   : > { %p416_p3 = scmp.lt.s32.totalorder (!%p355_p2), %s811_s10, 2  ;;  %v890_v0 = vmov (!%p355_p2), 0.0   ;;  %vm891_vm0 = vmmov (!%p355_p2), 0   ;;  %vm456_vm1 = vcmask (!%p355_p2), 254976   ;;  %vm517_vm2 = vcmask (!%p355_p2), 261120  }
   0x6   : > { %358 = sbr.rel (%p355_p2) target bundleno = 875 (0x36b), region = 56  ;;  %844 = vmatprep.subr.bf16.mxu0 (!%p355_p2), %v890_v0  ;;  %848 = vmatprep.mubr.msk.bf16.mxu0 (!%p355_p2), %vm891_vm0, %v890_v0  ;;  %vm666_vm3 = vcmask (!%p355_p2), 17408  }
   0x7   : > { %852 = vmatprep.subr.bf16.mxu1 (!%p355_p2), %v890_v0  ;;  %856 = vmatprep.mubr.msk.bf16.mxu1 (!%p355_p2), %vm891_vm0, %v890_v0 }
   0xd   : > { %s1021_s10 = smov (!%p416_p3, %s811_s10), 2 }
   0xe   : > { %s836_s11 = sshll.u32 %s1021_s10, 4  ;;  %s816_s12 = sshll.u32 %s1021_s10, 1 }
   0xf   : > { %s430_s15 = scalar_lea.vmem %s1013_s3, %s836_s11  ;;  %s419_s18 = scalar_lea.vmem %s1010_s0, %s816_s12 }
  0x10   : > { %v870_v1 = vld [vmem:[%s430_s15] sm:$0xff]   ;;  %v871_v2 = vld [vmem:[%s430_s15 + $0x8] sm:$0xff]   ;;  %s422_s21 = scalar_lea.vmem %s1011_s1, %s1021_s10  ;;  %s425_s24 = scalar_lea.vmem %s1012_s2, %s1021_s10 }
  0x11   : > { %845 = vmatpush3.bf16.msra.mxu0 %v870_v1  ;;  %v453_v3 = vld [vmem:[%s419_s18] sm:$0x3]  ;;  %s444_s27 = scalar_lea.vmem %s1017_s7, %s836_s11  ;;  %s433_s13 = scalar_lea.vmem %s1014_s4, %s1021_s10 }
  0x12   : > { %846 = vmatprep.subr.bf16.mxu0 %v890_v0  ;;  %v457_v4 = vsel %vm456_vm1, %v453_v3, 0.0  ;;  %v822_v24 = vld [vmem:[%s422_s21] ss:$0 sm:$0xff]  ;;  %v873_v31 = vld [vmem:[%s444_s27 + $0x8] sm:$0xff]   ;;  %s436_s15 = scalar_lea.vmem %s1015_s5, %s1021_s10  ;;  %s439_s18 = scalar_lea.vmem %s1016_s6, %s1021_s10 }
  0x13   : > { %v458_v5 = vrot.slane %v457_v4, 4  ;;  %v823_v26 = vld [vmem:[%s425_s24] ss:$0 sm:$0xff]  ;;  %s447_s21 = scalar_lea.vmem %s1018_s8, %s1021_s10  ;;  %s451_s24 = scalar_lea.vmem %s1019_s9, %s816_s12 }
  0x14   : > { %v872_v30 = vld [vmem:[%s444_s27] sm:$0xff]  }
  0x15   : > { %847 = vmatpush3.bf16.msra.mxu0 %v871_v2  ;;  %v459_v6 = vadd.f32 %v458_v5, %v457_v4  ;;  %853 = vmatpush3.bf16.msra.mxu1 %v872_v30  ;;  %v824_v32 = vld [vmem:[%s433_s13] ss:$0 sm:$0xff] }
  0x16   : > { %854 = vmatprep.subr.bf16.mxu1 %v890_v0  ;;  %v828_v59 = vld [vmem:[%s436_s15] ss:$0 sm:$0xff] }
  0x17   : > { %v460_v7 = vrot.slane %v459_v6, 2  ;;  %v829_v61 = vld [vmem:[%s439_s18] ss:$0 sm:$0xff] }
  0x18   : > { %v830_v1 = vld [vmem:[%s447_s21] ss:$0 sm:$0xff] }
  0x19   : > { %v461_v8 = vadd.f32 %v460_v7, %v459_v6  ;;  %855 = vmatpush3.bf16.msra.mxu1 %v873_v31 }
  0x1b   : > { %v462_v9 = vrot.slane %v461_v8, 1 }
  0x1d   : > { %v463_v10 = vadd.f32 %v462_v9, %v461_v8 }
  0x1f   : > { %v465_v11 = vmul.f32 0.5, %v463_v10 }
  0x21   : > { %v466_v12 = vsub.f32 %v453_v3, %v465_v11 }
  0x23   : > { %v467_v13 = vmul.f32 %v466_v12, %v466_v12 }
  0x25   : > { %v468_v14 = vsel %vm456_vm1, %v467_v13, 0.0 }
  0x26   : > { %v469_v15 = vrot.slane %v468_v14, 4 }
  0x28   : > { %v470_v16 = vadd.f32 %v469_v15, %v468_v14 }
  0x2a   : > { %v471_v17 = vrot.slane %v470_v16, 2 }
  0x2c   : > { %v472_v18 = vadd.f32 %v471_v17, %v470_v16 }
  0x2e   : > { %v473_v19 = vrot.slane %v472_v18, 1 }
  0x30   : > { %v474_v20 = vadd.f32 %v473_v19, %v472_v18 }
  0x32   : > { %v475_v21 = vmul.f32 0.5, %v474_v20 }
  0x34   : > { %v476_v22 = vadd.f32 1e-05, %v475_v21 }
  0x36   : > { %874 = vrsqrt.f32 %v476_v22 }
  0x40   : > { %v875_v23 = vpop.eup %874 }
  0x41   : > { %v478_v25 = vmul.f32 %v875_v23, %v466_v12 }
  0x43   : > { %v485_v27 = vmul.f32 %v822_v24, %v478_v25 }
  0x45   : > { %v492_v28 = vadd.f32 %v823_v26, %v485_v27 }
  0x47   : > { %v493_v29 = vpack.c.bf16 %v492_v28, %v492_v28 }
  0x49   : > { %849 = vmatmul.mubr.msk.bf16.vlgmr.msra.gmra.mrb[0].mxu0 %vm517_vm2, %v493_v29 }
 0x11c   : > { %v555_v33 = vpop.f32.mrb[0].mxu0 }
 0x11d   : > { %v556_v34 = vadd.f32 %v824_v32, %v555_v33  ;;  %v850_v35 = vpop.f32.mrb[1].mxu0 }
 0x11e   : > { %v558_v36 = vpop.f32.mrb[2].mxu0 }
 0x11f   : > { %v561_v37 = vmax.f32 %v556_v34, 0.0  ;;  %v851_v38 = vpop.f32.mrb[3].mxu0 }
 0x121   : > { %v564_v39 = vsel %vm456_vm1, %v561_v37, 0.0 }
 0x122   : > { %v565_v40 = vrot.slane %v564_v39, 4 }
 0x124   : > { %v566_v41 = vadd.f32 %v565_v40, %v564_v39 }
 0x126   : > { %v567_v42 = vrot.slane %v566_v41, 2 }
 0x128   : > { %v568_v43 = vadd.f32 %v567_v42, %v566_v41 }
 0x12a   : > { %v569_v44 = vrot.slane %v568_v43, 1 }
 0x12c   : > { %v570_v45 = vadd.f32 %v569_v44, %v568_v43 }
 0x12e   : > { %v571_v46 = vmul.f32 0.5, %v570_v45 }
 0x130   : > { %v572_v47 = vsub.f32 %v561_v37, %v571_v46 }
 0x132   : > { %v573_v48 = vmul.f32 %v572_v47, %v572_v47 }
 0x134   : > { %v574_v49 = vsel %vm456_vm1, %v573_v48, 0.0 }
 0x135   : > { %v575_v50 = vrot.slane %v574_v49, 4 }
 0x137   : > { %v576_v51 = vadd.f32 %v575_v50, %v574_v49 }
 0x139   : > { %v577_v52 = vrot.slane %v576_v51, 2 }
 0x13b   : > { %v578_v53 = vadd.f32 %v577_v52, %v576_v51 }
 0x13d   : > { %v579_v54 = vrot.slane %v578_v53, 1 }
 0x13f   : > { %v580_v55 = vadd.f32 %v579_v54, %v578_v53 }
 0x141   : > { %v581_v56 = vmul.f32 0.5, %v580_v55 }
 0x143   : > { %v582_v57 = vadd.f32 1e-05, %v581_v56 }
 0x145   : > { %876 = vrsqrt.f32 %v582_v57 }
 0x14f   : > { %v877_v58 = vpop.eup %876 }
 0x150   : > { %v584_v60 = vmul.f32 %v877_v58, %v572_v47 }
 0x152   : > { %v591_v62 = vmul.f32 %v828_v59, %v584_v60 }
 0x154   : > { %v598_v63 = vadd.f32 %v829_v61, %v591_v62 }
 0x156   : > { %v599_v0 = vpack.c.bf16 %v598_v63, %v598_v63 }
 0x158   : > { %857 = vmatmul.mubr.msk.bf16.vlgmr.msra.gmra.mrb[0].mxu1 %vm517_vm2, %v599_v0 }
 0x22b   : > { %v660_v2 = vpop.f32.mrb[0].mxu1 }
 0x22c   : > { %v661_v3 = vadd.f32 %v830_v1, %v660_v2  ;;  %v858_v4 = vpop.f32.mrb[1].mxu1 }
 0x22d   : > { %v663_v5 = vpop.f32.mrb[2].mxu1 }
 0x22e   : > { %v859_v6 = vpop.f32.mrb[3].mxu1  ;;  %v667_v7 = vsel %vm666_vm3, %v661_v3, -inf }
 0x22f   : > { %668 = vmax.xlane.f32.xlu0 %v667_v7 }
 0x2bc   : > { %v669_v8 = vpop.xlane.xlu0 %668 }
 0x2bd   : > { %v670_v9 = vsub.f32 %v661_v3, %v669_v8 }
 0x2bf   : > { %v671_v10 = vmul.f32 1.442695, %v670_v9 }
 0x2c1   : > { %878 = vpow2.f32 %v671_v10 }
 0x2cb   : > { %v879_v11 = vpop.eup %878 }
 0x2cc   : > { %v673_v12 = vsel %vm666_vm3, %v879_v11, 0.0 }
 0x2cd   : > { %674 = vadd.xlane.f32.xlu0 %v673_v12 }
 0x35a   : > { %v675_v13 = vpop.xlane.xlu0 %674 }
 0x35b   : > { %880 = vlog2.f32 %v675_v13 }
 0x365   : > { %v881_v14 = vpop.eup %880 }
 0x366   : > { %v677_v15 = vmul.f32 0.6931472, %v881_v14 }
 0x368   : > { %v678_v16 = vsub.f32 %v670_v9, %v677_v15 }
 0x36a   : > { %679 = vst.msk [vmem:[%s451_s24] sm:$0x3] %vm666_vm3, %v678_v16 }
 0x36b PF: > { %s19_s30 = sadd.s32 1, %s888_s30  }
 0x36c   : > { %p16_p4 = scmp.ge.s32.totalorder %s19_s30, 5  }
 0x36e   :  { %18 = sbr.rel (!%p16_p4) target bundleno = 1 (0x1), region = 110 }

</bundles_post_ra>
